<compile_context>
chip_gen: v7x
topology: tpu7x:2x2x1
jax: 0.10.0
libtpu: 0.0.40
codegen_flags: <defaults>
</compile_context>

<pallas_src>
import math
from functools import partial

import jax
import jax.numpy as jnp
from jax.experimental import pallas as pl
from jax.experimental.pallas import tpu as pltpu

# ---- synthetic "bert-tiny" config (structure matches HF BertModel used by BertCustom) ----
VOCAB      = 100
TYPE_VOCAB = 2
MAX_POS    = 32
HIDDEN     = 32
N_LAYERS   = 2
N_HEADS    = 2
HEAD_DIM   = HIDDEN // N_HEADS
INTER      = 64
N_CLASSES  = 3
LN_EPS     = 1e-12

B, S  = 2, 8                  # batch, sequence length
M_TOK = B * S

NEG_BIG = -1e9


# ----------------------------- small helpers -----------------------------

def _full_spec(shape):
    nd = len(shape)
    return pl.BlockSpec(shape, lambda i: (0,) * nd)


def _gelu_tanh(y):
    # TODO(synk): HF BERT 'gelu' is exact erf-GELU; tanh approximation used here
    # (erf lowering in Mosaic is not guaranteed).  ~1e-3-level deviation.
    c = math.sqrt(2.0 / math.pi)
    return 0.5 * y * (1.0 + jnp.tanh(c * (y + 0.044715 * y * y * y)))


def _layernorm(x, g, b, eps):
    mean = jnp.mean(x, axis=-1, keepdims=True)
    d = x - mean
    var = jnp.mean(d * d, axis=-1, keepdims=True)
    return d * jax.lax.rsqrt(var + eps) * g + b


# ----------------------------- fused Pallas kernel -----------------------------

def _bert_fused_kernel(label_ref, emb_ref, amask_ref, emb_g_ref, emb_b_ref,
                       wqkv_ref, bqkv_ref, wo_ref, bo_ref,
                       ln1_g_ref, ln1_b_ref, wi_ref, bi_ref, wf_ref, bf_ref,
                       ln2_g_ref, ln2_b_ref,
                       pool_w_ref, pool_b_ref, head_w_ref, head_b_ref,
                       probs_ref, logits_ref, pooled_ref, loss_ref,
                       *, n_layers, n_heads, head_dim, hidden, batch, seq, eps):
    f32 = jnp.float32
    bf16 = jnp.bfloat16

    # ---- embedding LayerNorm (fused; no separate launch, no lane padding) ----
    x = _layernorm(emb_ref[...], emb_g_ref[...], emb_b_ref[...], eps)      # (B*S, H) f32

    # additive key-padding bias: one (1, S) row per sequence
    key_bias = (1.0 - amask_ref[...]) * NEG_BIG                            # (B, S)
    bias_rows = [key_bias[b:b + 1, :] for b in range(batch)]

    scale = 1.0 / math.sqrt(head_dim)

    for l in range(n_layers):
        # fused QKV projection: bf16 MXU operands, f32 accumulation
        qkv = jnp.dot(x.astype(bf16), wqkv_ref[l],
                      preferred_element_type=f32) + bqkv_ref[l]            # (B*S, 3H)

        attn_rows = []
        for b in range(batch):
            r0 = b * seq
            ctx_heads = []
            for h in range(n_heads):
                c0 = h * head_dim
                qh = qkv[r0:r0 + seq, c0:c0 + head_dim]                            # (S, D)
                kh = qkv[r0:r0 + seq, hidden + c0:hidden + c0 + head_dim]          # (S, D)
                vh = qkv[r0:r0 + seq, 2 * hidden + c0:2 * hidden + c0 + head_dim]  # (S, D)

                s = jax.lax.dot_general(qh, kh, (((1,), (1,)), ((), ())),
                                        preferred_element_type=f32)
                s = s * scale + bias_rows[b]                               # (S, S)
                mrow = jnp.max(s, axis=-1, keepdims=True)
                e = jnp.exp(s - mrow)
                p = e / jnp.sum(e, axis=-1, keepdims=True)                 # exact softmax
                probs_ref[(l * batch + b) * n_heads + h, :, :] = p         # (S, S) block
                ctx_heads.append(jnp.dot(p, vh, preferred_element_type=f32))
            attn_rows.append(jnp.concatenate(ctx_heads, axis=1))           # (S, H)
        ctx = jnp.concatenate(attn_rows, axis=0)                           # (B*S, H)

        attn_out = jnp.dot(ctx.astype(bf16), wo_ref[l],
                           preferred_element_type=f32) + bo_ref[l]
        x1 = _layernorm(attn_out + x, ln1_g_ref[l], ln1_b_ref[l], eps)

        inter = _gelu_tanh(jnp.dot(x1.astype(bf16), wi_ref[l],
                                   preferred_element_type=f32) + bi_ref[l])
        ffn = jnp.dot(inter.astype(bf16), wf_ref[l],
                      preferred_element_type=f32) + bf_ref[l]
        x = _layernorm(ffn + x1, ln2_g_ref[l], ln2_b_ref[l], eps)
        # TODO(synk): hidden/attention dropout (p=0.4) omitted — eval()/inference semantics.

    # ---- pooler: tanh(Linear(CLS)); CLS rows selected with a tiny one-hot matmul ----
    row_b = jax.lax.broadcasted_iota(jnp.int32, (batch, batch * seq), 0)
    col_t = jax.lax.broadcasted_iota(jnp.int32, (batch, batch * seq), 1)
    sel = (col_t == row_b * seq).astype(f32)                               # (B, B*S)
    cls = jnp.dot(sel, x, preferred_element_type=f32)                      # (B, H)
    pooled = jnp.tanh(jnp.dot(cls.astype(bf16), pool_w_ref[...],
                              preferred_element_type=f32) + pool_b_ref[...])
    pooled_ref[...] = pooled

    # ---- classification head + cross-entropy (mean over batch) ----
    logits = jnp.dot(pooled.astype(bf16), head_w_ref[...],
                     preferred_element_type=f32) + head_b_ref[...]         # (B, C)
    logits_ref[...] = logits

    mlog = jnp.max(logits, axis=-1, keepdims=True)
    lse = jnp.log(jnp.sum(jnp.exp(logits - mlog), axis=-1, keepdims=True)) + mlog
    lane = jax.lax.broadcasted_iota(jnp.int32, logits.shape, 1)
    row = jax.lax.broadcasted_iota(jnp.int32, logits.shape, 0)
    lab = jnp.zeros(logits.shape, jnp.int32)
    for bi in range(batch):
        lab = jnp.where(row == bi, label_ref[bi], lab)
    onehot = (lane == lab).astype(f32)
    tgt = jnp.sum(logits * onehot, axis=-1, keepdims=True)
    loss_ref[...] = jnp.sum(lse - tgt, axis=0, keepdims=True) / batch


# ----------------------------- parameters -----------------------------

def init_params(key):
    keys = iter(jax.random.split(key, 64))

    def nrm(shape):
        return 0.02 * jax.random.normal(next(keys), shape, jnp.float32)

    p = {
        "word_emb": nrm((VOCAB, HIDDEN)),
        "pos_emb":  nrm((MAX_POS, HIDDEN)),
        "type_emb": nrm((TYPE_VOCAB, HIDDEN)),
        "emb_ln_g": jnp.ones((HIDDEN,), jnp.float32),
        "emb_ln_b": jnp.zeros((HIDDEN,), jnp.float32),
        "layers": [],
        "pool_w": nrm((HIDDEN, HIDDEN)),
        "pool_b": jnp.zeros((HIDDEN,), jnp.float32),
        "head_w": nrm((HIDDEN, N_CLASSES)),
        "head_b": jnp.zeros((N_CLASSES,), jnp.float32),
    }
    for _ in range(N_LAYERS):
        p["layers"].append({
            "q_w": nrm((HIDDEN, HIDDEN)), "q_b": jnp.zeros((HIDDEN,), jnp.float32),
            "k_w": nrm((HIDDEN, HIDDEN)), "k_b": jnp.zeros((HIDDEN,), jnp.float32),
            "v_w": nrm((HIDDEN, HIDDEN)), "v_b": jnp.zeros((HIDDEN,), jnp.float32),
            "o_w": nrm((HIDDEN, HIDDEN)), "o_b": jnp.zeros((HIDDEN,), jnp.float32),
            "ln1_g": jnp.ones((HIDDEN,), jnp.float32), "ln1_b": jnp.zeros((HIDDEN,), jnp.float32),
            "i_w": nrm((HIDDEN, INTER)),  "i_b": jnp.zeros((INTER,), jnp.float32),
            "f_w": nrm((INTER, HIDDEN)),  "f_b": jnp.zeros((HIDDEN,), jnp.float32),
            "ln2_g": jnp.ones((HIDDEN,), jnp.float32), "ln2_b": jnp.zeros((HIDDEN,), jnp.float32),
        })
    return p


def pack_params(p):
    """Stack per-layer weights along a leading layer dim; cast matmul weights to bf16.
    No lane padding — kernels work on the natural (HIDDEN=32) widths."""

    def row(v):
        return v.reshape(1, -1).astype(jnp.float32)

    def stack(fn, dtype=jnp.float32):
        return jnp.stack([fn(lp) for lp in p["layers"]], axis=0).astype(dtype)

    return {
        "word_emb": p["word_emb"], "pos_emb": p["pos_emb"], "type_emb": p["type_emb"],
        "emb_ln_g": row(p["emb_ln_g"]), "emb_ln_b": row(p["emb_ln_b"]),
        # fused QKV: columns [q | k | v], each HIDDEN wide (head h = lanes h*HEAD_DIM..)
        "wqkv": stack(lambda lp: jnp.concatenate([lp["q_w"], lp["k_w"], lp["v_w"]], axis=1),
                      jnp.bfloat16),
        "bqkv": stack(lambda lp: jnp.concatenate([lp["q_b"], lp["k_b"], lp["v_b"]])[None, :]),
        "wo": stack(lambda lp: lp["o_w"], jnp.bfloat16),
        "bo": stack(lambda lp: lp["o_b"][None, :]),
        "ln1_g": stack(lambda lp: lp["ln1_g"][None, :]),
        "ln1_b": stack(lambda lp: lp["ln1_b"][None, :]),
        "wi": stack(lambda lp: lp["i_w"], jnp.bfloat16),
        "bi": stack(lambda lp: lp["i_b"][None, :]),
        "wf": stack(lambda lp: lp["f_w"], jnp.bfloat16),
        "bf": stack(lambda lp: lp["f_b"][None, :]),
        "ln2_g": stack(lambda lp: lp["ln2_g"][None, :]),
        "ln2_b": stack(lambda lp: lp["ln2_b"][None, :]),
        "pool_w": p["pool_w"].astype(jnp.bfloat16), "pool_b": row(p["pool_b"]),
        "head_w": p["head_w"].astype(jnp.bfloat16), "head_b": row(p["head_b"]),
    }


# ----------------------------- forward (BertCustom, task='sequence_classification') ---

def bert_custom_forward(pp, input_ids, attention_mask=None, token_type_ids=None, label=None):
    bsz, seq = input_ids.shape
    m_tok = bsz * seq
    if attention_mask is None:
        attention_mask = jnp.ones((bsz, seq), jnp.float32)
    if token_type_ids is None:
        token_type_ids = jnp.zeros((bsz, seq), jnp.int32)

    # embedding table gathers stay as XLA glue; everything else runs in one kernel
    emb = (jnp.take(pp["word_emb"], input_ids, axis=0)
           + pp["pos_emb"][None, :seq, :]
           + jnp.take(pp["type_emb"], token_type_ids, axis=0)
           ).reshape(m_tok, HIDDEN).astype(jnp.float32)

    lbl = (label if label is not None else jnp.zeros((bsz,), jnp.int32)).astype(jnp.int32)

    ins = (lbl, emb, attention_mask.astype(jnp.float32),
           pp["emb_ln_g"], pp["emb_ln_b"],
           pp["wqkv"], pp["bqkv"], pp["wo"], pp["bo"],
           pp["ln1_g"], pp["ln1_b"], pp["wi"], pp["bi"], pp["wf"], pp["bf"],
           pp["ln2_g"], pp["ln2_b"],
           pp["pool_w"], pp["pool_b"], pp["head_w"], pp["head_b"])

    in_specs = ([pl.BlockSpec(memory_space=pltpu.MemorySpace.SMEM)]     # labels -> SMEM scalars
                + [_full_spec(a.shape) for a in ins[1:]])

    out_shape = (
        jax.ShapeDtypeStruct((N_LAYERS * bsz * N_HEADS, seq, seq), jnp.float32),  # attn probs
        jax.ShapeDtypeStruct((bsz, N_CLASSES), jnp.float32),                      # logits
        jax.ShapeDtypeStruct((bsz, HIDDEN), jnp.float32),                         # pooled
        jax.ShapeDtypeStruct((1, 1), jnp.float32),                                # loss
    )
    out_specs = tuple(_full_spec(s.shape) for s in out_shape)

    probs3, logits, pooled, loss11 = pl.pallas_call(
        partial(_bert_fused_kernel, n_layers=N_LAYERS, n_heads=N_HEADS,
                head_dim=HEAD_DIM, hidden=HIDDEN, batch=bsz, seq=seq, eps=LN_EPS),
        grid=(1,),
        out_shape=out_shape,
        in_specs=in_specs,
        out_specs=out_specs,
        compiler_params=pltpu.CompilerParams(dimension_semantics=("arbitrary",)),
    )(*ins)

    probs = probs3.reshape(N_LAYERS, bsz, N_HEADS, seq, seq)
    attentions = tuple(probs[l] for l in range(N_LAYERS))
    loss = loss11[0, 0] if label is not None else None
    return logits, attentions, pooled, loss


# ----------------------------- demo -----------------------------

if __name__ == "__main__":
    key = jax.random.PRNGKey(0)
    pkey, ikey, lkey = jax.random.split(key, 3)

    params = pack_params(init_params(pkey))

    input_ids = jax.random.randint(ikey, (B, S), 0, VOCAB, dtype=jnp.int32)
    attention_mask = jnp.ones((B, S), jnp.float32).at[:, -2:].set(0.0)   # last 2 tokens padded
    token_type_ids = jnp.zeros((B, S), jnp.int32)
    label = jax.random.randint(lkey, (B,), 0, N_CLASSES, dtype=jnp.int32)

    fwd = jax.jit(bert_custom_forward)
    logits, attentions, pooled, loss = fwd(
        params, input_ids, attention_mask, token_type_ids, label)
    jax.block_until_ready((logits, attentions, pooled, loss))

    assert logits.shape == (B, N_CLASSES)
    assert pooled.shape == (B, HIDDEN)
    assert len(attentions) == N_LAYERS and attentions[0].shape == (B, N_HEADS, S, S)
    assert loss.shape == ()
    assert bool(jnp.isfinite(loss))
    # each attention row must sum to ~1 over (unmasked) keys
    assert bool(jnp.all(jnp.abs(jnp.sum(attentions[0], axis=-1) - 1.0) < 1e-3))
    print("KERNEL_OK")
</pallas_src>

<mosaic_0001>
module attributes {stable_mosaic.version = 11 : i64} {
  func.func @_bert_fused_kernel(%arg0: i32, %arg1: memref<2xi32, #tpu.memory_space<smem>>, %arg2: memref<16x32xf32, #tpu.memory_space<vmem>>, %arg3: memref<2x8xf32, #tpu.memory_space<vmem>>, %arg4: memref<1x32xf32, #tpu.memory_space<vmem>>, %arg5: memref<1x32xf32, #tpu.memory_space<vmem>>, %arg6: memref<2x32x96xbf16, #tpu.memory_space<vmem>>, %arg7: memref<2x1x96xf32, #tpu.memory_space<vmem>>, %arg8: memref<2x32x32xbf16, #tpu.memory_space<vmem>>, %arg9: memref<2x1x32xf32, #tpu.memory_space<vmem>>, %arg10: memref<2x1x32xf32, #tpu.memory_space<vmem>>, %arg11: memref<2x1x32xf32, #tpu.memory_space<vmem>>, %arg12: memref<2x32x64xbf16, #tpu.memory_space<vmem>>, %arg13: memref<2x1x64xf32, #tpu.memory_space<vmem>>, %arg14: memref<2x64x32xbf16, #tpu.memory_space<vmem>>, %arg15: memref<2x1x32xf32, #tpu.memory_space<vmem>>, %arg16: memref<2x1x32xf32, #tpu.memory_space<vmem>>, %arg17: memref<2x1x32xf32, #tpu.memory_space<vmem>>, %arg18: memref<32x32xbf16, #tpu.memory_space<vmem>>, %arg19: memref<1x32xf32, #tpu.memory_space<vmem>>, %arg20: memref<32x3xbf16, #tpu.memory_space<vmem>>, %arg21: memref<1x3xf32, #tpu.memory_space<vmem>>, %arg22: memref<8x8x8xf32, #tpu.memory_space<vmem>>, %arg23: memref<2x3xf32, #tpu.memory_space<vmem>>, %arg24: memref<2x32xf32, #tpu.memory_space<vmem>>, %arg25: memref<1x1xf32, #tpu.memory_space<vmem>>) attributes {dimension_semantics = [#tpu.dimension_semantics<arbitrary>], iteration_bounds = array<i64: 1>, scalar_prefetch = 0 : i64, scratch_operands = 0 : i64, tpu.core_type = #tpu.core_type<tc>, window_params = [{transform_indices = @transform_0, window_bounds = array<i64: 2>}, {pipeline_mode = #tpu.pipeline_mode<synchronous>, transform_indices = @transform_1, window_bounds = array<i64: 16, 32>}, {pipeline_mode = #tpu.pipeline_mode<synchronous>, transform_indices = @transform_2, window_bounds = array<i64: 2, 8>}, {pipeline_mode = #tpu.pipeline_mode<synchronous>, transform_indices = @transform_3, window_bounds = array<i64: 1, 32>}, {pipeline_mode = #tpu.pipeline_mode<synchronous>, transform_indices = @transform_4, window_bounds = array<i64: 1, 32>}, {pipeline_mode = #tpu.pipeline_mode<synchronous>, transform_indices = @transform_5, window_bounds = array<i64: 2, 32, 96>}, {pipeline_mode = #tpu.pipeline_mode<synchronous>, transform_indices = @transform_6, window_bounds = array<i64: 2, 1, 96>}, {pipeline_mode = #tpu.pipeline_mode<synchronous>, transform_indices = @transform_7, window_bounds = array<i64: 2, 32, 32>}, {pipeline_mode = #tpu.pipeline_mode<synchronous>, transform_indices = @transform_8, window_bounds = array<i64: 2, 1, 32>}, {pipeline_mode = #tpu.pipeline_mode<synchronous>, transform_indices = @transform_9, window_bounds = array<i64: 2, 1, 32>}, {pipeline_mode = #tpu.pipeline_mode<synchronous>, transform_indices = @transform_10, window_bounds = array<i64: 2, 1, 32>}, {pipeline_mode = #tpu.pipeline_mode<synchronous>, transform_indices = @transform_11, window_bounds = array<i64: 2, 32, 64>}, {pipeline_mode = #tpu.pipeline_mode<synchronous>, transform_indices = @transform_12, window_bounds = array<i64: 2, 1, 64>}, {pipeline_mode = #tpu.pipeline_mode<synchronous>, transform_indices = @transform_13, window_bounds = array<i64: 2, 64, 32>}, {pipeline_mode = #tpu.pipeline_mode<synchronous>, transform_indices = @transform_14, window_bounds = array<i64: 2, 1, 32>}, {pipeline_mode = #tpu.pipeline_mode<synchronous>, transform_indices = @transform_15, window_bounds = array<i64: 2, 1, 32>}, {pipeline_mode = #tpu.pipeline_mode<synchronous>, transform_indices = @transform_16, window_bounds = array<i64: 2, 1, 32>}, {pipeline_mode = #tpu.pipeline_mode<synchronous>, transform_indices = @transform_17, window_bounds = array<i64: 32, 32>}, {pipeline_mode = #tpu.pipeline_mode<synchronous>, transform_indices = @transform_18, window_bounds = array<i64: 1, 32>}, {pipeline_mode = #tpu.pipeline_mode<synchronous>, transform_indices = @transform_19, window_bounds = array<i64: 32, 3>}, {pipeline_mode = #tpu.pipeline_mode<synchronous>, transform_indices = @transform_20, window_bounds = array<i64: 1, 3>}, {pipeline_mode = #tpu.pipeline_mode<synchronous>, transform_indices = @transform_21, window_bounds = array<i64: 8, 8, 8>}, {pipeline_mode = #tpu.pipeline_mode<synchronous>, transform_indices = @transform_22, window_bounds = array<i64: 2, 3>}, {pipeline_mode = #tpu.pipeline_mode<synchronous>, transform_indices = @transform_23, window_bounds = array<i64: 2, 32>}, {pipeline_mode = #tpu.pipeline_mode<synchronous>, transform_indices = @transform_24, window_bounds = array<i64: 1, 1>}]} {
    %c0 = arith.constant 0 : index
    %c0_0 = arith.constant 0 : index
    %0 = vector.load %arg2[%c0, %c0_0] : memref<16x32xf32, #tpu.memory_space<vmem>>, vector<16x32xf32>
    %c0_1 = arith.constant 0 : index
    %c0_2 = arith.constant 0 : index
    %1 = vector.load %arg4[%c0_1, %c0_2] : memref<1x32xf32, #tpu.memory_space<vmem>>, vector<1x32xf32>
    %c0_3 = arith.constant 0 : index
    %c0_4 = arith.constant 0 : index
    %2 = vector.load %arg5[%c0_3, %c0_4] : memref<1x32xf32, #tpu.memory_space<vmem>>, vector<1x32xf32>
    %cst = arith.constant dense<0.000000e+00> : vector<16xf32>
    %3 = vector.multi_reduction <add>, %0, %cst [1] : vector<16x32xf32> to vector<16xf32>
    %4 = vector.shape_cast %3 : vector<16xf32> to vector<16x1xf32>
    %cst_5 = arith.constant 3.200000e+01 : f32
    %5 = vector.broadcast %cst_5 : f32 to vector<16x1xf32>
    %6 = arith.divf %4, %5 : vector<16x1xf32>
    %7 = vector.broadcast %6 : vector<16x1xf32> to vector<16x32xf32>
    %8 = arith.subf %0, %7 : vector<16x32xf32>
    %9 = arith.mulf %8, %8 : vector<16x32xf32>
    %cst_6 = arith.constant dense<0.000000e+00> : vector<16xf32>
    %10 = vector.multi_reduction <add>, %9, %cst_6 [1] : vector<16x32xf32> to vector<16xf32>
    %11 = vector.shape_cast %10 : vector<16xf32> to vector<16x1xf32>
    %cst_7 = arith.constant 3.200000e+01 : f32
    %12 = vector.broadcast %cst_7 : f32 to vector<16x1xf32>
    %13 = arith.divf %11, %12 : vector<16x1xf32>
    %cst_8 = arith.constant 9.99999996E-13 : f32
    %14 = vector.broadcast %cst_8 : f32 to vector<16x1xf32>
    %15 = arith.addf %13, %14 : vector<16x1xf32>
    %16 = math.rsqrt %15 : vector<16x1xf32>
    %17 = vector.broadcast %16 : vector<16x1xf32> to vector<16x32xf32>
    %18 = arith.mulf %8, %17 : vector<16x32xf32>
    %19 = vector.broadcast %1 : vector<1x32xf32> to vector<16x32xf32>
    %20 = arith.mulf %18, %19 : vector<16x32xf32>
    %21 = vector.broadcast %2 : vector<1x32xf32> to vector<16x32xf32>
    %22 = arith.addf %20, %21 : vector<16x32xf32>
    %c0_9 = arith.constant 0 : index
    %c0_10 = arith.constant 0 : index
    %23 = vector.load %arg3[%c0_9, %c0_10] : memref<2x8xf32, #tpu.memory_space<vmem>>, vector<2x8xf32>
    %cst_11 = arith.constant 1.000000e+00 : f32
    %24 = vector.broadcast %cst_11 : f32 to vector<2x8xf32>
    %25 = arith.subf %24, %23 : vector<2x8xf32>
    %cst_12 = arith.constant -1.000000e+09 : f32
    %26 = vector.broadcast %cst_12 : f32 to vector<2x8xf32>
    %27 = arith.mulf %25, %26 : vector<2x8xf32>
    %28 = vector.extract_strided_slice %27 {offsets = [0, 0], sizes = [1, 8], strides = [1, 1]} : vector<2x8xf32> to vector<1x8xf32>
    %29 = vector.extract_strided_slice %27 {offsets = [1, 0], sizes = [1, 8], strides = [1, 1]} : vector<2x8xf32> to vector<1x8xf32>
    %30 = arith.truncf %22 : vector<16x32xf32> to vector<16x32xbf16>
    %c0_13 = arith.constant 0 : index
    %c0_14 = arith.constant 0 : index
    %c0_15 = arith.constant 0 : index
    %31 = vector.load %arg6[%c0_13, %c0_14, %c0_15] : memref<2x32x96xbf16, #tpu.memory_space<vmem>>, vector<1x32x96xbf16>
    %32 = vector.shape_cast %31 : vector<1x32x96xbf16> to vector<32x96xbf16>
    %cst_16 = arith.constant dense<0.000000e+00> : vector<16x96xf32>
    %33 = tpu.matmul %30, %32, %cst_16 {dimension_numbers = #tpu.dot_dimension_numbers<[1], [0], [0], [1], [0, 0, 1, 1], [], []>} : vector<16x32xbf16>, vector<32x96xbf16>, vector<16x96xf32> -> vector<16x96xf32>
    %c0_17 = arith.constant 0 : index
    %c0_18 = arith.constant 0 : index
    %c0_19 = arith.constant 0 : index
    %34 = vector.load %arg7[%c0_17, %c0_18, %c0_19] : memref<2x1x96xf32, #tpu.memory_space<vmem>>, vector<1x1x96xf32>
    %35 = vector.shape_cast %34 : vector<1x1x96xf32> to vector<1x96xf32>
    %36 = vector.broadcast %35 : vector<1x96xf32> to vector<16x96xf32>
    %37 = arith.addf %33, %36 : vector<16x96xf32>
    %38 = vector.extract_strided_slice %37 {offsets = [0, 0], sizes = [8, 16], strides = [1, 1]} : vector<16x96xf32> to vector<8x16xf32>
    %39 = vector.extract_strided_slice %37 {offsets = [0, 32], sizes = [8, 16], strides = [1, 1]} : vector<16x96xf32> to vector<8x16xf32>
    %40 = vector.extract_strided_slice %37 {offsets = [0, 64], sizes = [8, 16], strides = [1, 1]} : vector<16x96xf32> to vector<8x16xf32>
    %cst_20 = arith.constant dense<0.000000e+00> : vector<8x8xf32>
    %41 = tpu.matmul %38, %39, %cst_20 {dimension_numbers = #tpu.dot_dimension_numbers<[1], [1], [0], [0], [0, 0, 1, 0], [], []>} : vector<8x16xf32>, vector<8x16xf32>, vector<8x8xf32> -> vector<8x8xf32>
    %cst_21 = arith.constant 2.500000e-01 : f32
    %42 = vector.broadcast %cst_21 : f32 to vector<8x8xf32>
    %43 = arith.mulf %41, %42 : vector<8x8xf32>
    %44 = vector.broadcast %28 : vector<1x8xf32> to vector<8x8xf32>
    %45 = arith.addf %43, %44 : vector<8x8xf32>
    %cst_22 = arith.constant dense<0xFF800000> : vector<8xf32>
    %46 = vector.multi_reduction <maximumf>, %45, %cst_22 [1] : vector<8x8xf32> to vector<8xf32>
    %47 = vector.shape_cast %46 : vector<8xf32> to vector<8x1xf32>
    %48 = vector.broadcast %47 : vector<8x1xf32> to vector<8x8xf32>
    %49 = arith.subf %45, %48 : vector<8x8xf32>
    %50 = math.exp %49 : vector<8x8xf32>
    %cst_23 = arith.constant dense<0.000000e+00> : vector<8xf32>
    %51 = vector.multi_reduction <add>, %50, %cst_23 [1] : vector<8x8xf32> to vector<8xf32>
    %52 = vector.shape_cast %51 : vector<8xf32> to vector<8x1xf32>
    %53 = vector.broadcast %52 : vector<8x1xf32> to vector<8x8xf32>
    %54 = arith.divf %50, %53 : vector<8x8xf32>
    %c0_24 = arith.constant 0 : index
    %c0_25 = arith.constant 0 : index
    %c0_26 = arith.constant 0 : index
    %55 = vector.load %arg22[%c0_24, %c0_25, %c0_26] : memref<8x8x8xf32, #tpu.memory_space<vmem>>, vector<1x8x8xf32>
    %56 = vector.shape_cast %55 : vector<1x8x8xf32> to vector<8x8xf32>
    %57 = vector.shape_cast %54 : vector<8x8xf32> to vector<1x8x8xf32>
    tpu.vector_store %arg22[%c0_24, %c0_25, %c0_26], %57 {strides = array<i32>} : memref<8x8x8xf32, #tpu.memory_space<vmem>>, vector<1x8x8xf32>,
    %cst_27 = arith.constant dense<0.000000e+00> : vector<8x16xf32>
    %58 = tpu.matmul %54, %40, %cst_27 {dimension_numbers = #tpu.dot_dimension_numbers<[1], [0], [0], [1], [0, 0, 1, 1], [], []>} : vector<8x8xf32>, vector<8x16xf32>, vector<8x16xf32> -> vector<8x16xf32>
    %59 = vector.extract_strided_slice %37 {offsets = [0, 16], sizes = [8, 16], strides = [1, 1]} : vector<16x96xf32> to vector<8x16xf32>
    %60 = vector.extract_strided_slice %37 {offsets = [0, 48], sizes = [8, 16], strides = [1, 1]} : vector<16x96xf32> to vector<8x16xf32>
    %61 = vector.extract_strided_slice %37 {offsets = [0, 80], sizes = [8, 16], strides = [1, 1]} : vector<16x96xf32> to vector<8x16xf32>
    %cst_28 = arith.constant dense<0.000000e+00> : vector<8x8xf32>
    %62 = tpu.matmul %59, %60, %cst_28 {dimension_numbers = #tpu.dot_dimension_numbers<[1], [1], [0], [0], [0, 0, 1, 0], [], []>} : vector<8x16xf32>, vector<8x16xf32>, vector<8x8xf32> -> vector<8x8xf32>
    %cst_29 = arith.constant 2.500000e-01 : f32
    %63 = vector.broadcast %cst_29 : f32 to vector<8x8xf32>
    %64 = arith.mulf %62, %63 : vector<8x8xf32>
    %65 = vector.broadcast %28 : vector<1x8xf32> to vector<8x8xf32>
    %66 = arith.addf %64, %65 : vector<8x8xf32>
    %cst_30 = arith.constant dense<0xFF800000> : vector<8xf32>
    %67 = vector.multi_reduction <maximumf>, %66, %cst_30 [1] : vector<8x8xf32> to vector<8xf32>
    %68 = vector.shape_cast %67 : vector<8xf32> to vector<8x1xf32>
    %69 = vector.broadcast %68 : vector<8x1xf32> to vector<8x8xf32>
    %70 = arith.subf %66, %69 : vector<8x8xf32>
    %71 = math.exp %70 : vector<8x8xf32>
    %cst_31 = arith.constant dense<0.000000e+00> : vector<8xf32>
    %72 = vector.multi_reduction <add>, %71, %cst_31 [1] : vector<8x8xf32> to vector<8xf32>
    %73 = vector.shape_cast %72 : vector<8xf32> to vector<8x1xf32>
    %74 = vector.broadcast %73 : vector<8x1xf32> to vector<8x8xf32>
    %75 = arith.divf %71, %74 : vector<8x8xf32>
    %c1 = arith.constant 1 : index
    %c0_32 = arith.constant 0 : index
    %c0_33 = arith.constant 0 : index
    %76 = vector.load %arg22[%c1, %c0_32, %c0_33] : memref<8x8x8xf32, #tpu.memory_space<vmem>>, vector<1x8x8xf32>
    %77 = vector.shape_cast %76 : vector<1x8x8xf32> to vector<8x8xf32>
    %78 = vector.shape_cast %75 : vector<8x8xf32> to vector<1x8x8xf32>
    tpu.vector_store %arg22[%c1, %c0_32, %c0_33], %78 {strides = array<i32>} : memref<8x8x8xf32, #tpu.memory_space<vmem>>, vector<1x8x8xf32>,
    %cst_34 = arith.constant dense<0.000000e+00> : vector<8x16xf32>
    %79 = tpu.matmul %75, %61, %cst_34 {dimension_numbers = #tpu.dot_dimension_numbers<[1], [0], [0], [1], [0, 0, 1, 1], [], []>} : vector<8x8xf32>, vector<8x16xf32>, vector<8x16xf32> -> vector<8x16xf32>
    %80 = tpu.concatenate %58, %79 in 1 : vector<8x16xf32>, vector<8x16xf32> -> vector<8x32xf32>
    %81 = vector.extract_strided_slice %37 {offsets = [8, 0], sizes = [8, 16], strides = [1, 1]} : vector<16x96xf32> to vector<8x16xf32>
    %82 = vector.extract_strided_slice %37 {offsets = [8, 32], sizes = [8, 16], strides = [1, 1]} : vector<16x96xf32> to vector<8x16xf32>
    %83 = vector.extract_strided_slice %37 {offsets = [8, 64], sizes = [8, 16], strides = [1, 1]} : vector<16x96xf32> to vector<8x16xf32>
    %cst_35 = arith.constant dense<0.000000e+00> : vector<8x8xf32>
    %84 = tpu.matmul %81, %82, %cst_35 {dimension_numbers = #tpu.dot_dimension_numbers<[1], [1], [0], [0], [0, 0, 1, 0], [], []>} : vector<8x16xf32>, vector<8x16xf32>, vector<8x8xf32> -> vector<8x8xf32>
    %cst_36 = arith.constant 2.500000e-01 : f32
    %85 = vector.broadcast %cst_36 : f32 to vector<8x8xf32>
    %86 = arith.mulf %84, %85 : vector<8x8xf32>
    %87 = vector.broadcast %29 : vector<1x8xf32> to vector<8x8xf32>
    %88 = arith.addf %86, %87 : vector<8x8xf32>
    %cst_37 = arith.constant dense<0xFF800000> : vector<8xf32>
    %89 = vector.multi_reduction <maximumf>, %88, %cst_37 [1] : vector<8x8xf32> to vector<8xf32>
    %90 = vector.shape_cast %89 : vector<8xf32> to vector<8x1xf32>
    %91 = vector.broadcast %90 : vector<8x1xf32> to vector<8x8xf32>
    %92 = arith.subf %88, %91 : vector<8x8xf32>
    %93 = math.exp %92 : vector<8x8xf32>
    %cst_38 = arith.constant dense<0.000000e+00> : vector<8xf32>
    %94 = vector.multi_reduction <add>, %93, %cst_38 [1] : vector<8x8xf32> to vector<8xf32>
    %95 = vector.shape_cast %94 : vector<8xf32> to vector<8x1xf32>
    %96 = vector.broadcast %95 : vector<8x1xf32> to vector<8x8xf32>
    %97 = arith.divf %93, %96 : vector<8x8xf32>
    %c2 = arith.constant 2 : index
    %c0_39 = arith.constant 0 : index
    %c0_40 = arith.constant 0 : index
    %98 = vector.load %arg22[%c2, %c0_39, %c0_40] : memref<8x8x8xf32, #tpu.memory_space<vmem>>, vector<1x8x8xf32>
    %99 = vector.shape_cast %98 : vector<1x8x8xf32> to vector<8x8xf32>
    %100 = vector.shape_cast %97 : vector<8x8xf32> to vector<1x8x8xf32>
    tpu.vector_store %arg22[%c2, %c0_39, %c0_40], %100 {strides = array<i32>} : memref<8x8x8xf32, #tpu.memory_space<vmem>>, vector<1x8x8xf32>,
    %cst_41 = arith.constant dense<0.000000e+00> : vector<8x16xf32>
    %101 = tpu.matmul %97, %83, %cst_41 {dimension_numbers = #tpu.dot_dimension_numbers<[1], [0], [0], [1], [0, 0, 1, 1], [], []>} : vector<8x8xf32>, vector<8x16xf32>, vector<8x16xf32> -> vector<8x16xf32>
    %102 = vector.extract_strided_slice %37 {offsets = [8, 16], sizes = [8, 16], strides = [1, 1]} : vector<16x96xf32> to vector<8x16xf32>
    %103 = vector.extract_strided_slice %37 {offsets = [8, 48], sizes = [8, 16], strides = [1, 1]} : vector<16x96xf32> to vector<8x16xf32>
    %104 = vector.extract_strided_slice %37 {offsets = [8, 80], sizes = [8, 16], strides = [1, 1]} : vector<16x96xf32> to vector<8x16xf32>
    %cst_42 = arith.constant dense<0.000000e+00> : vector<8x8xf32>
    %105 = tpu.matmul %102, %103, %cst_42 {dimension_numbers = #tpu.dot_dimension_numbers<[1], [1], [0], [0], [0, 0, 1, 0], [], []>} : vector<8x16xf32>, vector<8x16xf32>, vector<8x8xf32> -> vector<8x8xf32>
    %cst_43 = arith.constant 2.500000e-01 : f32
    %106 = vector.broadcast %cst_43 : f32 to vector<8x8xf32>
    %107 = arith.mulf %105, %106 : vector<8x8xf32>
    %108 = vector.broadcast %29 : vector<1x8xf32> to vector<8x8xf32>
    %109 = arith.addf %107, %108 : vector<8x8xf32>
    %cst_44 = arith.constant dense<0xFF800000> : vector<8xf32>
    %110 = vector.multi_reduction <maximumf>, %109, %cst_44 [1] : vector<8x8xf32> to vector<8xf32>
    %111 = vector.shape_cast %110 : vector<8xf32> to vector<8x1xf32>
    %112 = vector.broadcast %111 : vector<8x1xf32> to vector<8x8xf32>
    %113 = arith.subf %109, %112 : vector<8x8xf32>
    %114 = math.exp %113 : vector<8x8xf32>
    %cst_45 = arith.constant dense<0.000000e+00> : vector<8xf32>
    %115 = vector.multi_reduction <add>, %114, %cst_45 [1] : vector<8x8xf32> to vector<8xf32>
    %116 = vector.shape_cast %115 : vector<8xf32> to vector<8x1xf32>
    %117 = vector.broadcast %116 : vector<8x1xf32> to vector<8x8xf32>
    %118 = arith.divf %114, %117 : vector<8x8xf32>
    %c3 = arith.constant 3 : index
    %c0_46 = arith.constant 0 : index
    %c0_47 = arith.constant 0 : index
    %119 = vector.load %arg22[%c3, %c0_46, %c0_47] : memref<8x8x8xf32, #tpu.memory_space<vmem>>, vector<1x8x8xf32>
    %120 = vector.shape_cast %119 : vector<1x8x8xf32> to vector<8x8xf32>
    %121 = vector.shape_cast %118 : vector<8x8xf32> to vector<1x8x8xf32>
    tpu.vector_store %arg22[%c3, %c0_46, %c0_47], %121 {strides = array<i32>} : memref<8x8x8xf32, #tpu.memory_space<vmem>>, vector<1x8x8xf32>,
    %cst_48 = arith.constant dense<0.000000e+00> : vector<8x16xf32>
    %122 = tpu.matmul %118, %104, %cst_48 {dimension_numbers = #tpu.dot_dimension_numbers<[1], [0], [0], [1], [0, 0, 1, 1], [], []>} : vector<8x8xf32>, vector<8x16xf32>, vector<8x16xf32> -> vector<8x16xf32>
    %123 = tpu.concatenate %101, %122 in 1 : vector<8x16xf32>, vector<8x16xf32> -> vector<8x32xf32>
    %124 = tpu.concatenate %80, %123 in 0 : vector<8x32xf32>, vector<8x32xf32> -> vector<16x32xf32>
    %125 = arith.truncf %124 : vector<16x32xf32> to vector<16x32xbf16>
    %c0_49 = arith.constant 0 : index
    %c0_50 = arith.constant 0 : index
    %c0_51 = arith.constant 0 : index
    %126 = vector.load %arg8[%c0_49, %c0_50, %c0_51] : memref<2x32x32xbf16, #tpu.memory_space<vmem>>, vector<1x32x32xbf16>
    %127 = vector.shape_cast %126 : vector<1x32x32xbf16> to vector<32x32xbf16>
    %cst_52 = arith.constant dense<0.000000e+00> : vector<16x32xf32>
    %128 = tpu.matmul %125, %127, %cst_52 {dimension_numbers = #tpu.dot_dimension_numbers<[1], [0], [0], [1], [0, 0, 1, 1], [], []>} : vector<16x32xbf16>, vector<32x32xbf16>, vector<16x32xf32> -> vector<16x32xf32>
    %c0_53 = arith.constant 0 : index
    %c0_54 = arith.constant 0 : index
    %c0_55 = arith.constant 0 : index
    %129 = vector.load %arg9[%c0_53, %c0_54, %c0_55] : memref<2x1x32xf32, #tpu.memory_space<vmem>>, vector<1x1x32xf32>
    %130 = vector.shape_cast %129 : vector<1x1x32xf32> to vector<1x32xf32>
    %131 = vector.broadcast %130 : vector<1x32xf32> to vector<16x32xf32>
    %132 = arith.addf %128, %131 : vector<16x32xf32>
    %133 = arith.addf %132, %22 : vector<16x32xf32>
    %c0_56 = arith.constant 0 : index
    %c0_57 = arith.constant 0 : index
    %c0_58 = arith.constant 0 : index
    %134 = vector.load %arg10[%c0_56, %c0_57, %c0_58] : memref<2x1x32xf32, #tpu.memory_space<vmem>>, vector<1x1x32xf32>
    %135 = vector.shape_cast %134 : vector<1x1x32xf32> to vector<1x32xf32>
    %c0_59 = arith.constant 0 : index
    %c0_60 = arith.constant 0 : index
    %c0_61 = arith.constant 0 : index
    %136 = vector.load %arg11[%c0_59, %c0_60, %c0_61] : memref<2x1x32xf32, #tpu.memory_space<vmem>>, vector<1x1x32xf32>
    %137 = vector.shape_cast %136 : vector<1x1x32xf32> to vector<1x32xf32>
    %cst_62 = arith.constant dense<0.000000e+00> : vector<16xf32>
    %138 = vector.multi_reduction <add>, %133, %cst_62 [1] : vector<16x32xf32> to vector<16xf32>
    %139 = vector.shape_cast %138 : vector<16xf32> to vector<16x1xf32>
    %cst_63 = arith.constant 3.200000e+01 : f32
    %140 = vector.broadcast %cst_63 : f32 to vector<16x1xf32>
    %141 = arith.divf %139, %140 : vector<16x1xf32>
    %142 = vector.broadcast %141 : vector<16x1xf32> to vector<16x32xf32>
    %143 = arith.subf %133, %142 : vector<16x32xf32>
    %144 = arith.mulf %143, %143 : vector<16x32xf32>
    %cst_64 = arith.constant dense<0.000000e+00> : vector<16xf32>
    %145 = vector.multi_reduction <add>, %144, %cst_64 [1] : vector<16x32xf32> to vector<16xf32>
    %146 = vector.shape_cast %145 : vector<16xf32> to vector<16x1xf32>
    %cst_65 = arith.constant 3.200000e+01 : f32
    %147 = vector.broadcast %cst_65 : f32 to vector<16x1xf32>
    %148 = arith.divf %146, %147 : vector<16x1xf32>
    %cst_66 = arith.constant 9.99999996E-13 : f32
    %149 = vector.broadcast %cst_66 : f32 to vector<16x1xf32>
    %150 = arith.addf %148, %149 : vector<16x1xf32>
    %151 = math.rsqrt %150 : vector<16x1xf32>
    %152 = vector.broadcast %151 : vector<16x1xf32> to vector<16x32xf32>
    %153 = arith.mulf %143, %152 : vector<16x32xf32>
    %154 = vector.broadcast %135 : vector<1x32xf32> to vector<16x32xf32>
    %155 = arith.mulf %153, %154 : vector<16x32xf32>
    %156 = vector.broadcast %137 : vector<1x32xf32> to vector<16x32xf32>
    %157 = arith.addf %155, %156 : vector<16x32xf32>
    %158 = arith.truncf %157 : vector<16x32xf32> to vector<16x32xbf16>
    %c0_67 = arith.constant 0 : index
    %c0_68 = arith.constant 0 : index
    %c0_69 = arith.constant 0 : index
    %159 = vector.load %arg12[%c0_67, %c0_68, %c0_69] : memref<2x32x64xbf16, #tpu.memory_space<vmem>>, vector<1x32x64xbf16>
    %160 = vector.shape_cast %159 : vector<1x32x64xbf16> to vector<32x64xbf16>
    %cst_70 = arith.constant dense<0.000000e+00> : vector<16x64xf32>
    %161 = tpu.matmul %158, %160, %cst_70 {dimension_numbers = #tpu.dot_dimension_numbers<[1], [0], [0], [1], [0, 0, 1, 1], [], []>} : vector<16x32xbf16>, vector<32x64xbf16>, vector<16x64xf32> -> vector<16x64xf32>
    %c0_71 = arith.constant 0 : index
    %c0_72 = arith.constant 0 : index
    %c0_73 = arith.constant 0 : index
    %162 = vector.load %arg13[%c0_71, %c0_72, %c0_73] : memref<2x1x64xf32, #tpu.memory_space<vmem>>, vector<1x1x64xf32>
    %163 = vector.shape_cast %162 : vector<1x1x64xf32> to vector<1x64xf32>
    %164 = vector.broadcast %163 : vector<1x64xf32> to vector<16x64xf32>
    %165 = arith.addf %161, %164 : vector<16x64xf32>
    %cst_74 = arith.constant 5.000000e-01 : f32
    %166 = vector.broadcast %cst_74 : f32 to vector<16x64xf32>
    %167 = arith.mulf %166, %165 : vector<16x64xf32>
    %cst_75 = arith.constant 4.471500e-02 : f32
    %168 = vector.broadcast %cst_75 : f32 to vector<16x64xf32>
    %169 = arith.mulf %168, %165 : vector<16x64xf32>
    %170 = arith.mulf %169, %165 : vector<16x64xf32>
    %171 = arith.mulf %170, %165 : vector<16x64xf32>
    %172 = arith.addf %165, %171 : vector<16x64xf32>
    %cst_76 = arith.constant 0.797884583 : f32
    %173 = vector.broadcast %cst_76 : f32 to vector<16x64xf32>
    %174 = arith.mulf %173, %172 : vector<16x64xf32>
    %175 = math.tanh %174 : vector<16x64xf32>
    %cst_77 = arith.constant 1.000000e+00 : f32
    %176 = vector.broadcast %cst_77 : f32 to vector<16x64xf32>
    %177 = arith.addf %176, %175 : vector<16x64xf32>
    %178 = arith.mulf %167, %177 : vector<16x64xf32>
    %179 = arith.truncf %178 : vector<16x64xf32> to vector<16x64xbf16>
    %c0_78 = arith.constant 0 : index
    %c0_79 = arith.constant 0 : index
    %c0_80 = arith.constant 0 : index
    %180 = vector.load %arg14[%c0_78, %c0_79, %c0_80] : memref<2x64x32xbf16, #tpu.memory_space<vmem>>, vector<1x64x32xbf16>
    %181 = vector.shape_cast %180 : vector<1x64x32xbf16> to vector<64x32xbf16>
    %cst_81 = arith.constant dense<0.000000e+00> : vector<16x32xf32>
    %182 = tpu.matmul %179, %181, %cst_81 {dimension_numbers = #tpu.dot_dimension_numbers<[1], [0], [0], [1], [0, 0, 1, 1], [], []>} : vector<16x64xbf16>, vector<64x32xbf16>, vector<16x32xf32> -> vector<16x32xf32>
    %c0_82 = arith.constant 0 : index
    %c0_83 = arith.constant 0 : index
    %c0_84 = arith.constant 0 : index
    %183 = vector.load %arg15[%c0_82, %c0_83, %c0_84] : memref<2x1x32xf32, #tpu.memory_space<vmem>>, vector<1x1x32xf32>
    %184 = vector.shape_cast %183 : vector<1x1x32xf32> to vector<1x32xf32>
    %185 = vector.broadcast %184 : vector<1x32xf32> to vector<16x32xf32>
    %186 = arith.addf %182, %185 : vector<16x32xf32>
    %187 = arith.addf %186, %157 : vector<16x32xf32>
    %c0_85 = arith.constant 0 : index
    %c0_86 = arith.constant 0 : index
    %c0_87 = arith.constant 0 : index
    %188 = vector.load %arg16[%c0_85, %c0_86, %c0_87] : memref<2x1x32xf32, #tpu.memory_space<vmem>>, vector<1x1x32xf32>
    %189 = vector.shape_cast %188 : vector<1x1x32xf32> to vector<1x32xf32>
    %c0_88 = arith.constant 0 : index
    %c0_89 = arith.constant 0 : index
    %c0_90 = arith.constant 0 : index
    %190 = vector.load %arg17[%c0_88, %c0_89, %c0_90] : memref<2x1x32xf32, #tpu.memory_space<vmem>>, vector<1x1x32xf32>
    %191 = vector.shape_cast %190 : vector<1x1x32xf32> to vector<1x32xf32>
    %cst_91 = arith.constant dense<0.000000e+00> : vector<16xf32>
    %192 = vector.multi_reduction <add>, %187, %cst_91 [1] : vector<16x32xf32> to vector<16xf32>
    %193 = vector.shape_cast %192 : vector<16xf32> to vector<16x1xf32>
    %cst_92 = arith.constant 3.200000e+01 : f32
    %194 = vector.broadcast %cst_92 : f32 to vector<16x1xf32>
    %195 = arith.divf %193, %194 : vector<16x1xf32>
    %196 = vector.broadcast %195 : vector<16x1xf32> to vector<16x32xf32>
    %197 = arith.subf %187, %196 : vector<16x32xf32>
    %198 = arith.mulf %197, %197 : vector<16x32xf32>
    %cst_93 = arith.constant dense<0.000000e+00> : vector<16xf32>
    %199 = vector.multi_reduction <add>, %198, %cst_93 [1] : vector<16x32xf32> to vector<16xf32>
    %200 = vector.shape_cast %199 : vector<16xf32> to vector<16x1xf32>
    %cst_94 = arith.constant 3.200000e+01 : f32
    %201 = vector.broadcast %cst_94 : f32 to vector<16x1xf32>
    %202 = arith.divf %200, %201 : vector<16x1xf32>
    %cst_95 = arith.constant 9.99999996E-13 : f32
    %203 = vector.broadcast %cst_95 : f32 to vector<16x1xf32>
    %204 = arith.addf %202, %203 : vector<16x1xf32>
    %205 = math.rsqrt %204 : vector<16x1xf32>
    %206 = vector.broadcast %205 : vector<16x1xf32> to vector<16x32xf32>
    %207 = arith.mulf %197, %206 : vector<16x32xf32>
    %208 = vector.broadcast %189 : vector<1x32xf32> to vector<16x32xf32>
    %209 = arith.mulf %207, %208 : vector<16x32xf32>
    %210 = vector.broadcast %191 : vector<1x32xf32> to vector<16x32xf32>
    %211 = arith.addf %209, %210 : vector<16x32xf32>
    %212 = arith.truncf %211 : vector<16x32xf32> to vector<16x32xbf16>
    %c1_96 = arith.constant 1 : index
    %c0_97 = arith.constant 0 : index
    %c0_98 = arith.constant 0 : index
    %213 = vector.load %arg6[%c1_96, %c0_97, %c0_98] : memref<2x32x96xbf16, #tpu.memory_space<vmem>>, vector<1x32x96xbf16>
    %214 = vector.shape_cast %213 : vector<1x32x96xbf16> to vector<32x96xbf16>
    %cst_99 = arith.constant dense<0.000000e+00> : vector<16x96xf32>
    %215 = tpu.matmul %212, %214, %cst_99 {dimension_numbers = #tpu.dot_dimension_numbers<[1], [0], [0], [1], [0, 0, 1, 1], [], []>} : vector<16x32xbf16>, vector<32x96xbf16>, vector<16x96xf32> -> vector<16x96xf32>
    %c1_100 = arith.constant 1 : index
    %c0_101 = arith.constant 0 : index
    %c0_102 = arith.constant 0 : index
    %216 = vector.load %arg7[%c1_100, %c0_101, %c0_102] : memref<2x1x96xf32, #tpu.memory_space<vmem>>, vector<1x1x96xf32>
    %217 = vector.shape_cast %216 : vector<1x1x96xf32> to vector<1x96xf32>
    %218 = vector.broadcast %217 : vector<1x96xf32> to vector<16x96xf32>
    %219 = arith.addf %215, %218 : vector<16x96xf32>
    %220 = vector.extract_strided_slice %219 {offsets = [0, 0], sizes = [8, 16], strides = [1, 1]} : vector<16x96xf32> to vector<8x16xf32>
    %221 = vector.extract_strided_slice %219 {offsets = [0, 32], sizes = [8, 16], strides = [1, 1]} : vector<16x96xf32> to vector<8x16xf32>
    %222 = vector.extract_strided_slice %219 {offsets = [0, 64], sizes = [8, 16], strides = [1, 1]} : vector<16x96xf32> to vector<8x16xf32>
    %cst_103 = arith.constant dense<0.000000e+00> : vector<8x8xf32>
    %223 = tpu.matmul %220, %221, %cst_103 {dimension_numbers = #tpu.dot_dimension_numbers<[1], [1], [0], [0], [0, 0, 1, 0], [], []>} : vector<8x16xf32>, vector<8x16xf32>, vector<8x8xf32> -> vector<8x8xf32>
    %cst_104 = arith.constant 2.500000e-01 : f32
    %224 = vector.broadcast %cst_104 : f32 to vector<8x8xf32>
    %225 = arith.mulf %223, %224 : vector<8x8xf32>
    %226 = vector.broadcast %28 : vector<1x8xf32> to vector<8x8xf32>
    %227 = arith.addf %225, %226 : vector<8x8xf32>
    %cst_105 = arith.constant dense<0xFF800000> : vector<8xf32>
    %228 = vector.multi_reduction <maximumf>, %227, %cst_105 [1] : vector<8x8xf32> to vector<8xf32>
    %229 = vector.shape_cast %228 : vector<8xf32> to vector<8x1xf32>
    %230 = vector.broadcast %229 : vector<8x1xf32> to vector<8x8xf32>
    %231 = arith.subf %227, %230 : vector<8x8xf32>
    %232 = math.exp %231 : vector<8x8xf32>
    %cst_106 = arith.constant dense<0.000000e+00> : vector<8xf32>
    %233 = vector.multi_reduction <add>, %232, %cst_106 [1] : vector<8x8xf32> to vector<8xf32>
    %234 = vector.shape_cast %233 : vector<8xf32> to vector<8x1xf32>
    %235 = vector.broadcast %234 : vector<8x1xf32> to vector<8x8xf32>
    %236 = arith.divf %232, %235 : vector<8x8xf32>
    %c4 = arith.constant 4 : index
    %c0_107 = arith.constant 0 : index
    %c0_108 = arith.constant 0 : index
    %237 = vector.load %arg22[%c4, %c0_107, %c0_108] : memref<8x8x8xf32, #tpu.memory_space<vmem>>, vector<1x8x8xf32>
    %238 = vector.shape_cast %237 : vector<1x8x8xf32> to vector<8x8xf32>
    %239 = vector.shape_cast %236 : vector<8x8xf32> to vector<1x8x8xf32>
    tpu.vector_store %arg22[%c4, %c0_107, %c0_108], %239 {strides = array<i32>} : memref<8x8x8xf32, #tpu.memory_space<vmem>>, vector<1x8x8xf32>,
    %cst_109 = arith.constant dense<0.000000e+00> : vector<8x16xf32>
    %240 = tpu.matmul %236, %222, %cst_109 {dimension_numbers = #tpu.dot_dimension_numbers<[1], [0], [0], [1], [0, 0, 1, 1], [], []>} : vector<8x8xf32>, vector<8x16xf32>, vector<8x16xf32> -> vector<8x16xf32>
    %241 = vector.extract_strided_slice %219 {offsets = [0, 16], sizes = [8, 16], strides = [1, 1]} : vector<16x96xf32> to vector<8x16xf32>
    %242 = vector.extract_strided_slice %219 {offsets = [0, 48], sizes = [8, 16], strides = [1, 1]} : vector<16x96xf32> to vector<8x16xf32>
    %243 = vector.extract_strided_slice %219 {offsets = [0, 80], sizes = [8, 16], strides = [1, 1]} : vector<16x96xf32> to vector<8x16xf32>
    %cst_110 = arith.constant dense<0.000000e+00> : vector<8x8xf32>
    %244 = tpu.matmul %241, %242, %cst_110 {dimension_numbers = #tpu.dot_dimension_numbers<[1], [1], [0], [0], [0, 0, 1, 0], [], []>} : vector<8x16xf32>, vector<8x16xf32>, vector<8x8xf32> -> vector<8x8xf32>
    %cst_111 = arith.constant 2.500000e-01 : f32
    %245 = vector.broadcast %cst_111 : f32 to vector<8x8xf32>
    %246 = arith.mulf %244, %245 : vector<8x8xf32>
    %247 = vector.broadcast %28 : vector<1x8xf32> to vector<8x8xf32>
    %248 = arith.addf %246, %247 : vector<8x8xf32>
    %cst_112 = arith.constant dense<0xFF800000> : vector<8xf32>
    %249 = vector.multi_reduction <maximumf>, %248, %cst_112 [1] : vector<8x8xf32> to vector<8xf32>
    %250 = vector.shape_cast %249 : vector<8xf32> to vector<8x1xf32>
    %251 = vector.broadcast %250 : vector<8x1xf32> to vector<8x8xf32>
    %252 = arith.subf %248, %251 : vector<8x8xf32>
    %253 = math.exp %252 : vector<8x8xf32>
    %cst_113 = arith.constant dense<0.000000e+00> : vector<8xf32>
    %254 = vector.multi_reduction <add>, %253, %cst_113 [1] : vector<8x8xf32> to vector<8xf32>
    %255 = vector.shape_cast %254 : vector<8xf32> to vector<8x1xf32>
    %256 = vector.broadcast %255 : vector<8x1xf32> to vector<8x8xf32>
    %257 = arith.divf %253, %256 : vector<8x8xf32>
    %c5 = arith.constant 5 : index
    %c0_114 = arith.constant 0 : index
    %c0_115 = arith.constant 0 : index
    %258 = vector.load %arg22[%c5, %c0_114, %c0_115] : memref<8x8x8xf32, #tpu.memory_space<vmem>>, vector<1x8x8xf32>
    %259 = vector.shape_cast %258 : vector<1x8x8xf32> to vector<8x8xf32>
    %260 = vector.shape_cast %257 : vector<8x8xf32> to vector<1x8x8xf32>
    tpu.vector_store %arg22[%c5, %c0_114, %c0_115], %260 {strides = array<i32>} : memref<8x8x8xf32, #tpu.memory_space<vmem>>, vector<1x8x8xf32>,
    %cst_116 = arith.constant dense<0.000000e+00> : vector<8x16xf32>
    %261 = tpu.matmul %257, %243, %cst_116 {dimension_numbers = #tpu.dot_dimension_numbers<[1], [0], [0], [1], [0, 0, 1, 1], [], []>} : vector<8x8xf32>, vector<8x16xf32>, vector<8x16xf32> -> vector<8x16xf32>
    %262 = tpu.concatenate %240, %261 in 1 : vector<8x16xf32>, vector<8x16xf32> -> vector<8x32xf32>
    %263 = vector.extract_strided_slice %219 {offsets = [8, 0], sizes = [8, 16], strides = [1, 1]} : vector<16x96xf32> to vector<8x16xf32>
    %264 = vector.extract_strided_slice %219 {offsets = [8, 32], sizes = [8, 16], strides = [1, 1]} : vector<16x96xf32> to vector<8x16xf32>
    %265 = vector.extract_strided_slice %219 {offsets = [8, 64], sizes = [8, 16], strides = [1, 1]} : vector<16x96xf32> to vector<8x16xf32>
    %cst_117 = arith.constant dense<0.000000e+00> : vector<8x8xf32>
    %266 = tpu.matmul %263, %264, %cst_117 {dimension_numbers = #tpu.dot_dimension_numbers<[1], [1], [0], [0], [0, 0, 1, 0], [], []>} : vector<8x16xf32>, vector<8x16xf32>, vector<8x8xf32> -> vector<8x8xf32>
    %cst_118 = arith.constant 2.500000e-01 : f32
    %267 = vector.broadcast %cst_118 : f32 to vector<8x8xf32>
    %268 = arith.mulf %266, %267 : vector<8x8xf32>
    %269 = vector.broadcast %29 : vector<1x8xf32> to vector<8x8xf32>
    %270 = arith.addf %268, %269 : vector<8x8xf32>
    %cst_119 = arith.constant dense<0xFF800000> : vector<8xf32>
    %271 = vector.multi_reduction <maximumf>, %270, %cst_119 [1] : vector<8x8xf32> to vector<8xf32>
    %272 = vector.shape_cast %271 : vector<8xf32> to vector<8x1xf32>
    %273 = vector.broadcast %272 : vector<8x1xf32> to vector<8x8xf32>
    %274 = arith.subf %270, %273 : vector<8x8xf32>
    %275 = math.exp %274 : vector<8x8xf32>
    %cst_120 = arith.constant dense<0.000000e+00> : vector<8xf32>
    %276 = vector.multi_reduction <add>, %275, %cst_120 [1] : vector<8x8xf32> to vector<8xf32>
    %277 = vector.shape_cast %276 : vector<8xf32> to vector<8x1xf32>
    %278 = vector.broadcast %277 : vector<8x1xf32> to vector<8x8xf32>
    %279 = arith.divf %275, %278 : vector<8x8xf32>
    %c6 = arith.constant 6 : index
    %c0_121 = arith.constant 0 : index
    %c0_122 = arith.constant 0 : index
    %280 = vector.load %arg22[%c6, %c0_121, %c0_122] : memref<8x8x8xf32, #tpu.memory_space<vmem>>, vector<1x8x8xf32>
    %281 = vector.shape_cast %280 : vector<1x8x8xf32> to vector<8x8xf32>
    %282 = vector.shape_cast %279 : vector<8x8xf32> to vector<1x8x8xf32>
    tpu.vector_store %arg22[%c6, %c0_121, %c0_122], %282 {strides = array<i32>} : memref<8x8x8xf32, #tpu.memory_space<vmem>>, vector<1x8x8xf32>,
    %cst_123 = arith.constant dense<0.000000e+00> : vector<8x16xf32>
    %283 = tpu.matmul %279, %265, %cst_123 {dimension_numbers = #tpu.dot_dimension_numbers<[1], [0], [0], [1], [0, 0, 1, 1], [], []>} : vector<8x8xf32>, vector<8x16xf32>, vector<8x16xf32> -> vector<8x16xf32>
    %284 = vector.extract_strided_slice %219 {offsets = [8, 16], sizes = [8, 16], strides = [1, 1]} : vector<16x96xf32> to vector<8x16xf32>
    %285 = vector.extract_strided_slice %219 {offsets = [8, 48], sizes = [8, 16], strides = [1, 1]} : vector<16x96xf32> to vector<8x16xf32>
    %286 = vector.extract_strided_slice %219 {offsets = [8, 80], sizes = [8, 16], strides = [1, 1]} : vector<16x96xf32> to vector<8x16xf32>
    %cst_124 = arith.constant dense<0.000000e+00> : vector<8x8xf32>
    %287 = tpu.matmul %284, %285, %cst_124 {dimension_numbers = #tpu.dot_dimension_numbers<[1], [1], [0], [0], [0, 0, 1, 0], [], []>} : vector<8x16xf32>, vector<8x16xf32>, vector<8x8xf32> -> vector<8x8xf32>
    %cst_125 = arith.constant 2.500000e-01 : f32
    %288 = vector.broadcast %cst_125 : f32 to vector<8x8xf32>
    %289 = arith.mulf %287, %288 : vector<8x8xf32>
    %290 = vector.broadcast %29 : vector<1x8xf32> to vector<8x8xf32>
    %291 = arith.addf %289, %290 : vector<8x8xf32>
    %cst_126 = arith.constant dense<0xFF800000> : vector<8xf32>
    %292 = vector.multi_reduction <maximumf>, %291, %cst_126 [1] : vector<8x8xf32> to vector<8xf32>
    %293 = vector.shape_cast %292 : vector<8xf32> to vector<8x1xf32>
    %294 = vector.broadcast %293 : vector<8x1xf32> to vector<8x8xf32>
    %295 = arith.subf %291, %294 : vector<8x8xf32>
    %296 = math.exp %295 : vector<8x8xf32>
    %cst_127 = arith.constant dense<0.000000e+00> : vector<8xf32>
    %297 = vector.multi_reduction <add>, %296, %cst_127 [1] : vector<8x8xf32> to vector<8xf32>
    %298 = vector.shape_cast %297 : vector<8xf32> to vector<8x1xf32>
    %299 = vector.broadcast %298 : vector<8x1xf32> to vector<8x8xf32>
    %300 = arith.divf %296, %299 : vector<8x8xf32>
    %c7 = arith.constant 7 : index
    %c0_128 = arith.constant 0 : index
    %c0_129 = arith.constant 0 : index
    %301 = vector.load %arg22[%c7, %c0_128, %c0_129] : memref<8x8x8xf32, #tpu.memory_space<vmem>>, vector<1x8x8xf32>
    %302 = vector.shape_cast %301 : vector<1x8x8xf32> to vector<8x8xf32>
    %303 = vector.shape_cast %300 : vector<8x8xf32> to vector<1x8x8xf32>
    tpu.vector_store %arg22[%c7, %c0_128, %c0_129], %303 {strides = array<i32>} : memref<8x8x8xf32, #tpu.memory_space<vmem>>, vector<1x8x8xf32>,
    %cst_130 = arith.constant dense<0.000000e+00> : vector<8x16xf32>
    %304 = tpu.matmul %300, %286, %cst_130 {dimension_numbers = #tpu.dot_dimension_numbers<[1], [0], [0], [1], [0, 0, 1, 1], [], []>} : vector<8x8xf32>, vector<8x16xf32>, vector<8x16xf32> -> vector<8x16xf32>
    %305 = tpu.concatenate %283, %304 in 1 : vector<8x16xf32>, vector<8x16xf32> -> vector<8x32xf32>
    %306 = tpu.concatenate %262, %305 in 0 : vector<8x32xf32>, vector<8x32xf32> -> vector<16x32xf32>
    %307 = arith.truncf %306 : vector<16x32xf32> to vector<16x32xbf16>
    %c1_131 = arith.constant 1 : index
    %c0_132 = arith.constant 0 : index
    %c0_133 = arith.constant 0 : index
    %308 = vector.load %arg8[%c1_131, %c0_132, %c0_133] : memref<2x32x32xbf16, #tpu.memory_space<vmem>>, vector<1x32x32xbf16>
    %309 = vector.shape_cast %308 : vector<1x32x32xbf16> to vector<32x32xbf16>
    %cst_134 = arith.constant dense<0.000000e+00> : vector<16x32xf32>
    %310 = tpu.matmul %307, %309, %cst_134 {dimension_numbers = #tpu.dot_dimension_numbers<[1], [0], [0], [1], [0, 0, 1, 1], [], []>} : vector<16x32xbf16>, vector<32x32xbf16>, vector<16x32xf32> -> vector<16x32xf32>
    %c1_135 = arith.constant 1 : index
    %c0_136 = arith.constant 0 : index
    %c0_137 = arith.constant 0 : index
    %311 = vector.load %arg9[%c1_135, %c0_136, %c0_137] : memref<2x1x32xf32, #tpu.memory_space<vmem>>, vector<1x1x32xf32>
    %312 = vector.shape_cast %311 : vector<1x1x32xf32> to vector<1x32xf32>
    %313 = vector.broadcast %312 : vector<1x32xf32> to vector<16x32xf32>
    %314 = arith.addf %310, %313 : vector<16x32xf32>
    %315 = arith.addf %314, %211 : vector<16x32xf32>
    %c1_138 = arith.constant 1 : index
    %c0_139 = arith.constant 0 : index
    %c0_140 = arith.constant 0 : index
    %316 = vector.load %arg10[%c1_138, %c0_139, %c0_140] : memref<2x1x32xf32, #tpu.memory_space<vmem>>, vector<1x1x32xf32>
    %317 = vector.shape_cast %316 : vector<1x1x32xf32> to vector<1x32xf32>
    %c1_141 = arith.constant 1 : index
    %c0_142 = arith.constant 0 : index
    %c0_143 = arith.constant 0 : index
    %318 = vector.load %arg11[%c1_141, %c0_142, %c0_143] : memref<2x1x32xf32, #tpu.memory_space<vmem>>, vector<1x1x32xf32>
    %319 = vector.shape_cast %318 : vector<1x1x32xf32> to vector<1x32xf32>
    %cst_144 = arith.constant dense<0.000000e+00> : vector<16xf32>
    %320 = vector.multi_reduction <add>, %315, %cst_144 [1] : vector<16x32xf32> to vector<16xf32>
    %321 = vector.shape_cast %320 : vector<16xf32> to vector<16x1xf32>
    %cst_145 = arith.constant 3.200000e+01 : f32
    %322 = vector.broadcast %cst_145 : f32 to vector<16x1xf32>
    %323 = arith.divf %321, %322 : vector<16x1xf32>
    %324 = vector.broadcast %323 : vector<16x1xf32> to vector<16x32xf32>
    %325 = arith.subf %315, %324 : vector<16x32xf32>
    %326 = arith.mulf %325, %325 : vector<16x32xf32>
    %cst_146 = arith.constant dense<0.000000e+00> : vector<16xf32>
    %327 = vector.multi_reduction <add>, %326, %cst_146 [1] : vector<16x32xf32> to vector<16xf32>
    %328 = vector.shape_cast %327 : vector<16xf32> to vector<16x1xf32>
    %cst_147 = arith.constant 3.200000e+01 : f32
    %329 = vector.broadcast %cst_147 : f32 to vector<16x1xf32>
    %330 = arith.divf %328, %329 : vector<16x1xf32>
    %cst_148 = arith.constant 9.99999996E-13 : f32
    %331 = vector.broadcast %cst_148 : f32 to vector<16x1xf32>
    %332 = arith.addf %330, %331 : vector<16x1xf32>
    %333 = math.rsqrt %332 : vector<16x1xf32>
    %334 = vector.broadcast %333 : vector<16x1xf32> to vector<16x32xf32>
    %335 = arith.mulf %325, %334 : vector<16x32xf32>
    %336 = vector.broadcast %317 : vector<1x32xf32> to vector<16x32xf32>
    %337 = arith.mulf %335, %336 : vector<16x32xf32>
    %338 = vector.broadcast %319 : vector<1x32xf32> to vector<16x32xf32>
    %339 = arith.addf %337, %338 : vector<16x32xf32>
    %340 = arith.truncf %339 : vector<16x32xf32> to vector<16x32xbf16>
    %c1_149 = arith.constant 1 : index
    %c0_150 = arith.constant 0 : index
    %c0_151 = arith.constant 0 : index
    %341 = vector.load %arg12[%c1_149, %c0_150, %c0_151] : memref<2x32x64xbf16, #tpu.memory_space<vmem>>, vector<1x32x64xbf16>
    %342 = vector.shape_cast %341 : vector<1x32x64xbf16> to vector<32x64xbf16>
    %cst_152 = arith.constant dense<0.000000e+00> : vector<16x64xf32>
    %343 = tpu.matmul %340, %342, %cst_152 {dimension_numbers = #tpu.dot_dimension_numbers<[1], [0], [0], [1], [0, 0, 1, 1], [], []>} : vector<16x32xbf16>, vector<32x64xbf16>, vector<16x64xf32> -> vector<16x64xf32>
    %c1_153 = arith.constant 1 : index
    %c0_154 = arith.constant 0 : index
    %c0_155 = arith.constant 0 : index
    %344 = vector.load %arg13[%c1_153, %c0_154, %c0_155] : memref<2x1x64xf32, #tpu.memory_space<vmem>>, vector<1x1x64xf32>
    %345 = vector.shape_cast %344 : vector<1x1x64xf32> to vector<1x64xf32>
    %346 = vector.broadcast %345 : vector<1x64xf32> to vector<16x64xf32>
    %347 = arith.addf %343, %346 : vector<16x64xf32>
    %cst_156 = arith.constant 5.000000e-01 : f32
    %348 = vector.broadcast %cst_156 : f32 to vector<16x64xf32>
    %349 = arith.mulf %348, %347 : vector<16x64xf32>
    %cst_157 = arith.constant 4.471500e-02 : f32
    %350 = vector.broadcast %cst_157 : f32 to vector<16x64xf32>
    %351 = arith.mulf %350, %347 : vector<16x64xf32>
    %352 = arith.mulf %351, %347 : vector<16x64xf32>
    %353 = arith.mulf %352, %347 : vector<16x64xf32>
    %354 = arith.addf %347, %353 : vector<16x64xf32>
    %cst_158 = arith.constant 0.797884583 : f32
    %355 = vector.broadcast %cst_158 : f32 to vector<16x64xf32>
    %356 = arith.mulf %355, %354 : vector<16x64xf32>
    %357 = math.tanh %356 : vector<16x64xf32>
    %cst_159 = arith.constant 1.000000e+00 : f32
    %358 = vector.broadcast %cst_159 : f32 to vector<16x64xf32>
    %359 = arith.addf %358, %357 : vector<16x64xf32>
    %360 = arith.mulf %349, %359 : vector<16x64xf32>
    %361 = arith.truncf %360 : vector<16x64xf32> to vector<16x64xbf16>
    %c1_160 = arith.constant 1 : index
    %c0_161 = arith.constant 0 : index
    %c0_162 = arith.constant 0 : index
    %362 = vector.load %arg14[%c1_160, %c0_161, %c0_162] : memref<2x64x32xbf16, #tpu.memory_space<vmem>>, vector<1x64x32xbf16>
    %363 = vector.shape_cast %362 : vector<1x64x32xbf16> to vector<64x32xbf16>
    %cst_163 = arith.constant dense<0.000000e+00> : vector<16x32xf32>
    %364 = tpu.matmul %361, %363, %cst_163 {dimension_numbers = #tpu.dot_dimension_numbers<[1], [0], [0], [1], [0, 0, 1, 1], [], []>} : vector<16x64xbf16>, vector<64x32xbf16>, vector<16x32xf32> -> vector<16x32xf32>
    %c1_164 = arith.constant 1 : index
    %c0_165 = arith.constant 0 : index
    %c0_166 = arith.constant 0 : index
    %365 = vector.load %arg15[%c1_164, %c0_165, %c0_166] : memref<2x1x32xf32, #tpu.memory_space<vmem>>, vector<1x1x32xf32>
    %366 = vector.shape_cast %365 : vector<1x1x32xf32> to vector<1x32xf32>
    %367 = vector.broadcast %366 : vector<1x32xf32> to vector<16x32xf32>
    %368 = arith.addf %364, %367 : vector<16x32xf32>
    %369 = arith.addf %368, %339 : vector<16x32xf32>
    %c1_167 = arith.constant 1 : index
    %c0_168 = arith.constant 0 : index
    %c0_169 = arith.constant 0 : index
    %370 = vector.load %arg16[%c1_167, %c0_168, %c0_169] : memref<2x1x32xf32, #tpu.memory_space<vmem>>, vector<1x1x32xf32>
    %371 = vector.shape_cast %370 : vector<1x1x32xf32> to vector<1x32xf32>
    %c1_170 = arith.constant 1 : index
    %c0_171 = arith.constant 0 : index
    %c0_172 = arith.constant 0 : index
    %372 = vector.load %arg17[%c1_170, %c0_171, %c0_172] : memref<2x1x32xf32, #tpu.memory_space<vmem>>, vector<1x1x32xf32>
    %373 = vector.shape_cast %372 : vector<1x1x32xf32> to vector<1x32xf32>
    %cst_173 = arith.constant dense<0.000000e+00> : vector<16xf32>
    %374 = vector.multi_reduction <add>, %369, %cst_173 [1] : vector<16x32xf32> to vector<16xf32>
    %375 = vector.shape_cast %374 : vector<16xf32> to vector<16x1xf32>
    %cst_174 = arith.constant 3.200000e+01 : f32
    %376 = vector.broadcast %cst_174 : f32 to vector<16x1xf32>
    %377 = arith.divf %375, %376 : vector<16x1xf32>
    %378 = vector.broadcast %377 : vector<16x1xf32> to vector<16x32xf32>
    %379 = arith.subf %369, %378 : vector<16x32xf32>
    %380 = arith.mulf %379, %379 : vector<16x32xf32>
    %cst_175 = arith.constant dense<0.000000e+00> : vector<16xf32>
    %381 = vector.multi_reduction <add>, %380, %cst_175 [1] : vector<16x32xf32> to vector<16xf32>
    %382 = vector.shape_cast %381 : vector<16xf32> to vector<16x1xf32>
    %cst_176 = arith.constant 3.200000e+01 : f32
    %383 = vector.broadcast %cst_176 : f32 to vector<16x1xf32>
    %384 = arith.divf %382, %383 : vector<16x1xf32>
    %cst_177 = arith.constant 9.99999996E-13 : f32
    %385 = vector.broadcast %cst_177 : f32 to vector<16x1xf32>
    %386 = arith.addf %384, %385 : vector<16x1xf32>
    %387 = math.rsqrt %386 : vector<16x1xf32>
    %388 = vector.broadcast %387 : vector<16x1xf32> to vector<16x32xf32>
    %389 = arith.mulf %379, %388 : vector<16x32xf32>
    %390 = vector.broadcast %371 : vector<1x32xf32> to vector<16x32xf32>
    %391 = arith.mulf %389, %390 : vector<16x32xf32>
    %392 = vector.broadcast %373 : vector<1x32xf32> to vector<16x32xf32>
    %393 = arith.addf %391, %392 : vector<16x32xf32>
    %394 = tpu.iota {dimensions = array<i32: 0>} : vector<2x16xi32>
    %395 = tpu.iota {dimensions = array<i32: 1>} : vector<2x16xi32>
    %c8_i32 = arith.constant 8 : i32
    %396 = vector.broadcast %c8_i32 : i32 to vector<2x16xi32>
    %397 = arith.muli %394, %396 : vector<2x16xi32>
    %398 = arith.cmpi eq, %395, %397 : vector<2x16xi32>
    %399 = arith.extui %398 : vector<2x16xi1> to vector<2x16xi32>
    %400 = arith.sitofp %399 : vector<2x16xi32> to vector<2x16xf32>
    %cst_178 = arith.constant dense<0.000000e+00> : vector<2x32xf32>
    %401 = tpu.matmul %400, %393, %cst_178 {dimension_numbers = #tpu.dot_dimension_numbers<[1], [0], [0], [1], [0, 0, 1, 1], [], []>} : vector<2x16xf32>, vector<16x32xf32>, vector<2x32xf32> -> vector<2x32xf32>
    %402 = arith.truncf %401 : vector<2x32xf32> to vector<2x32xbf16>
    %c0_179 = arith.constant 0 : index
    %c0_180 = arith.constant 0 : index
    %403 = vector.load %arg18[%c0_179, %c0_180] : memref<32x32xbf16, #tpu.memory_space<vmem>>, vector<32x32xbf16>
    %cst_181 = arith.constant dense<0.000000e+00> : vector<2x32xf32>
    %404 = tpu.matmul %402, %403, %cst_181 {dimension_numbers = #tpu.dot_dimension_numbers<[1], [0], [0], [1], [0, 0, 1, 1], [], []>} : vector<2x32xbf16>, vector<32x32xbf16>, vector<2x32xf32> -> vector<2x32xf32>
    %c0_182 = arith.constant 0 : index
    %c0_183 = arith.constant 0 : index
    %405 = vector.load %arg19[%c0_182, %c0_183] : memref<1x32xf32, #tpu.memory_space<vmem>>, vector<1x32xf32>
    %406 = vector.broadcast %405 : vector<1x32xf32> to vector<2x32xf32>
    %407 = arith.addf %404, %406 : vector<2x32xf32>
    %408 = math.tanh %407 : vector<2x32xf32>
    %c0_184 = arith.constant 0 : index
    %c0_185 = arith.constant 0 : index
    %409 = vector.load %arg24[%c0_184, %c0_185] : memref<2x32xf32, #tpu.memory_space<vmem>>, vector<2x32xf32>
    tpu.vector_store %arg24[%c0_184, %c0_185], %408 {strides = array<i32>} : memref<2x32xf32, #tpu.memory_space<vmem>>, vector<2x32xf32>,
    %410 = arith.truncf %408 : vector<2x32xf32> to vector<2x32xbf16>
    %c0_186 = arith.constant 0 : index
    %c0_187 = arith.constant 0 : index
    %411 = vector.load %arg20[%c0_186, %c0_187] : memref<32x3xbf16, #tpu.memory_space<vmem>>, vector<32x3xbf16>
    %cst_188 = arith.constant dense<0.000000e+00> : vector<2x3xf32>
    %412 = tpu.matmul %410, %411, %cst_188 {dimension_numbers = #tpu.dot_dimension_numbers<[1], [0], [0], [1], [0, 0, 1, 1], [], []>} : vector<2x32xbf16>, vector<32x3xbf16>, vector<2x3xf32> -> vector<2x3xf32>
    %c0_189 = arith.constant 0 : index
    %c0_190 = arith.constant 0 : index
    %413 = vector.load %arg21[%c0_189, %c0_190] : memref<1x3xf32, #tpu.memory_space<vmem>>, vector<1x3xf32>
    %414 = vector.broadcast %413 : vector<1x3xf32> to vector<2x3xf32>
    %415 = arith.addf %412, %414 : vector<2x3xf32>
    %c0_191 = arith.constant 0 : index
    %c0_192 = arith.constant 0 : index
    %416 = vector.load %arg23[%c0_191, %c0_192] : memref<2x3xf32, #tpu.memory_space<vmem>>, vector<2x3xf32>
    tpu.vector_store %arg23[%c0_191, %c0_192], %415 {strides = array<i32>} : memref<2x3xf32, #tpu.memory_space<vmem>>, vector<2x3xf32>,
    %cst_193 = arith.constant dense<0xFF800000> : vector<2xf32>
    %417 = vector.multi_reduction <maximumf>, %415, %cst_193 [1] : vector<2x3xf32> to vector<2xf32>
    %418 = vector.shape_cast %417 : vector<2xf32> to vector<2x1xf32>
    %419 = vector.broadcast %418 : vector<2x1xf32> to vector<2x3xf32>
    %420 = arith.subf %415, %419 : vector<2x3xf32>
    %421 = math.exp %420 : vector<2x3xf32>
    %cst_194 = arith.constant dense<0.000000e+00> : vector<2xf32>
    %422 = vector.multi_reduction <add>, %421, %cst_194 [1] : vector<2x3xf32> to vector<2xf32>
    %423 = vector.shape_cast %422 : vector<2xf32> to vector<2x1xf32>
    %424 = math.log %423 : vector<2x1xf32>
    %425 = arith.addf %424, %418 : vector<2x1xf32>
    %426 = tpu.iota {dimensions = array<i32: 1>} : vector<2x3xi32>
    %427 = tpu.iota {dimensions = array<i32: 0>} : vector<2x3xi32>
    %c0_i32 = arith.constant 0 : i32
    %428 = vector.broadcast %c0_i32 : i32 to vector<2x3xi32>
    %c0_i32_195 = arith.constant 0 : i32
    %429 = vector.broadcast %c0_i32_195 : i32 to vector<2x3xi32>
    %430 = arith.cmpi eq, %427, %429 : vector<2x3xi32>
    %c0_196 = arith.constant 0 : index
    %431 = memref.load %arg1[%c0_196] : memref<2xi32, #tpu.memory_space<smem>>
    %432 = vector.broadcast %431 : i32 to vector<2x3xi32>
    %433 = arith.select %430, %432, %428 : vector<2x3xi1>, vector<2x3xi32>
    %c1_i32 = arith.constant 1 : i32
    %434 = vector.broadcast %c1_i32 : i32 to vector<2x3xi32>
    %435 = arith.cmpi eq, %427, %434 : vector<2x3xi32>
    %c1_197 = arith.constant 1 : index
    %436 = memref.load %arg1[%c1_197] : memref<2xi32, #tpu.memory_space<smem>>
    %437 = vector.broadcast %436 : i32 to vector<2x3xi32>
    %438 = arith.select %435, %437, %433 : vector<2x3xi1>, vector<2x3xi32>
    %439 = arith.cmpi eq, %426, %438 : vector<2x3xi32>
    %440 = arith.extui %439 : vector<2x3xi1> to vector<2x3xi32>
    %441 = arith.sitofp %440 : vector<2x3xi32> to vector<2x3xf32>
    %442 = arith.mulf %415, %441 : vector<2x3xf32>
    %cst_198 = arith.constant dense<0.000000e+00> : vector<2xf32>
    %443 = vector.multi_reduction <add>, %442, %cst_198 [1] : vector<2x3xf32> to vector<2xf32>
    %444 = vector.shape_cast %443 : vector<2xf32> to vector<2x1xf32>
    %445 = arith.subf %425, %444 : vector<2x1xf32>
    %cst_199 = arith.constant dense<0.000000e+00> : vector<1xf32>
    %446 = vector.multi_reduction <add>, %445, %cst_199 [0] : vector<2x1xf32> to vector<1xf32>
    %447 = vector.shape_cast %446 : vector<1xf32> to vector<1x1xf32>
    %cst_200 = arith.constant 2.000000e+00 : f32
    %448 = vector.broadcast %cst_200 : f32 to vector<1x1xf32>
    %449 = arith.divf %447, %448 : vector<1x1xf32>
    %c0_201 = arith.constant 0 : index
    %c0_202 = arith.constant 0 : index
    %450 = vector.load %arg25[%c0_201, %c0_202] : memref<1x1xf32, #tpu.memory_space<vmem>>, vector<1x1xf32>
    tpu.vector_store %arg25[%c0_201, %c0_202], %449 {strides = array<i32>} : memref<1x1xf32, #tpu.memory_space<vmem>>, vector<1x1xf32>,
    return
  }
  func.func @transform_0(%arg0: i32) -> i32 {
    %c0_i32 = arith.constant 0 : i32
    %c0_i32_0 = arith.constant 0 : i32
    return %c0_i32 : i32
  }
  func.func @transform_1(%arg0: i32) -> (i32, i32) {
    %c0_i32 = arith.constant 0 : i32
    %c0_i32_0 = arith.constant 0 : i32
    %c0_i32_1 = arith.constant 0 : i32
    return %c0_i32, %c0_i32_0 : i32, i32
  }
  func.func @transform_2(%arg0: i32) -> (i32, i32) {
    %c0_i32 = arith.constant 0 : i32
    %c0_i32_0 = arith.constant 0 : i32
    %c0_i32_1 = arith.constant 0 : i32
    return %c0_i32, %c0_i32_0 : i32, i32
  }
  func.func @transform_3(%arg0: i32) -> (i32, i32) {
    %c0_i32 = arith.constant 0 : i32
    %c0_i32_0 = arith.constant 0 : i32
    %c0_i32_1 = arith.constant 0 : i32
    return %c0_i32, %c0_i32_0 : i32, i32
  }
  func.func @transform_4(%arg0: i32) -> (i32, i32) {
    %c0_i32 = arith.constant 0 : i32
    %c0_i32_0 = arith.constant 0 : i32
    %c0_i32_1 = arith.constant 0 : i32
    return %c0_i32, %c0_i32_0 : i32, i32
  }
  func.func @transform_5(%arg0: i32) -> (i32, i32, i32) {
    %c0_i32 = arith.constant 0 : i32
    %c0_i32_0 = arith.constant 0 : i32
    %c0_i32_1 = arith.constant 0 : i32
    %c0_i32_2 = arith.constant 0 : i32
    return %c0_i32, %c0_i32_0, %c0_i32_1 : i32, i32, i32
  }
  func.func @transform_6(%arg0: i32) -> (i32, i32, i32) {
    %c0_i32 = arith.constant 0 : i32
    %c0_i32_0 = arith.constant 0 : i32
    %c0_i32_1 = arith.constant 0 : i32
    %c0_i32_2 = arith.constant 0 : i32
    return %c0_i32, %c0_i32_0, %c0_i32_1 : i32, i32, i32
  }
  func.func @transform_7(%arg0: i32) -> (i32, i32, i32) {
    %c0_i32 = arith.constant 0 : i32
    %c0_i32_0 = arith.constant 0 : i32
    %c0_i32_1 = arith.constant 0 : i32
    %c0_i32_2 = arith.constant 0 : i32
    return %c0_i32, %c0_i32_0, %c0_i32_1 : i32, i32, i32
  }
  func.func @transform_8(%arg0: i32) -> (i32, i32, i32) {
    %c0_i32 = arith.constant 0 : i32
    %c0_i32_0 = arith.constant 0 : i32
    %c0_i32_1 = arith.constant 0 : i32
    %c0_i32_2 = arith.constant 0 : i32
    return %c0_i32, %c0_i32_0, %c0_i32_1 : i32, i32, i32
  }
  func.func @transform_9(%arg0: i32) -> (i32, i32, i32) {
    %c0_i32 = arith.constant 0 : i32
    %c0_i32_0 = arith.constant 0 : i32
    %c0_i32_1 = arith.constant 0 : i32
    %c0_i32_2 = arith.constant 0 : i32
    return %c0_i32, %c0_i32_0, %c0_i32_1 : i32, i32, i32
  }
  func.func @transform_10(%arg0: i32) -> (i32, i32, i32) {
    %c0_i32 = arith.constant 0 : i32
    %c0_i32_0 = arith.constant 0 : i32
    %c0_i32_1 = arith.constant 0 : i32
    %c0_i32_2 = arith.constant 0 : i32
    return %c0_i32, %c0_i32_0, %c0_i32_1 : i32, i32, i32
  }
  func.func @transform_11(%arg0: i32) -> (i32, i32, i32) {
    %c0_i32 = arith.constant 0 : i32
    %c0_i32_0 = arith.constant 0 : i32
    %c0_i32_1 = arith.constant 0 : i32
    %c0_i32_2 = arith.constant 0 : i32
    return %c0_i32, %c0_i32_0, %c0_i32_1 : i32, i32, i32
  }
  func.func @transform_12(%arg0: i32) -> (i32, i32, i32) {
    %c0_i32 = arith.constant 0 : i32
    %c0_i32_0 = arith.constant 0 : i32
    %c0_i32_1 = arith.constant 0 : i32
    %c0_i32_2 = arith.constant 0 : i32
    return %c0_i32, %c0_i32_0, %c0_i32_1 : i32, i32, i32
  }
  func.func @transform_13(%arg0: i32) -> (i32, i32, i32) {
    %c0_i32 = arith.constant 0 : i32
    %c0_i32_0 = arith.constant 0 : i32
    %c0_i32_1 = arith.constant 0 : i32
    %c0_i32_2 = arith.constant 0 : i32
    return %c0_i32, %c0_i32_0, %c0_i32_1 : i32, i32, i32
  }
  func.func @transform_14(%arg0: i32) -> (i32, i32, i32) {
    %c0_i32 = arith.constant 0 : i32
    %c0_i32_0 = arith.constant 0 : i32
    %c0_i32_1 = arith.constant 0 : i32
    %c0_i32_2 = arith.constant 0 : i32
    return %c0_i32, %c0_i32_0, %c0_i32_1 : i32, i32, i32
  }
  func.func @transform_15(%arg0: i32) -> (i32, i32, i32) {
    %c0_i32 = arith.constant 0 : i32
    %c0_i32_0 = arith.constant 0 : i32
    %c0_i32_1 = arith.constant 0 : i32
    %c0_i32_2 = arith.constant 0 : i32
    return %c0_i32, %c0_i32_0, %c0_i32_1 : i32, i32, i32
  }
  func.func @transform_16(%arg0: i32) -> (i32, i32, i32) {
    %c0_i32 = arith.constant 0 : i32
    %c0_i32_0 = arith.constant 0 : i32
    %c0_i32_1 = arith.constant 0 : i32
    %c0_i32_2 = arith.constant 0 : i32
    return %c0_i32, %c0_i32_0, %c0_i32_1 : i32, i32, i32
  }
  func.func @transform_17(%arg0: i32) -> (i32, i32) {
    %c0_i32 = arith.constant 0 : i32
    %c0_i32_0 = arith.constant 0 : i32
    %c0_i32_1 = arith.constant 0 : i32
    return %c0_i32, %c0_i32_0 : i32, i32
  }
  func.func @transform_18(%arg0: i32) -> (i32, i32) {
    %c0_i32 = arith.constant 0 : i32
    %c0_i32_0 = arith.constant 0 : i32
    %c0_i32_1 = arith.constant 0 : i32
    return %c0_i32, %c0_i32_0 : i32, i32
  }
  func.func @transform_19(%arg0: i32) -> (i32, i32) {
    %c0_i32 = arith.constant 0 : i32
    %c0_i32_0 = arith.constant 0 : i32
    %c0_i32_1 = arith.constant 0 : i32
    return %c0_i32, %c0_i32_0 : i32, i32
  }
  func.func @transform_20(%arg0: i32) -> (i32, i32) {
    %c0_i32 = arith.constant 0 : i32
    %c0_i32_0 = arith.constant 0 : i32
    %c0_i32_1 = arith.constant 0 : i32
    return %c0_i32, %c0_i32_0 : i32, i32
  }
  func.func @transform_21(%arg0: i32) -> (i32, i32, i32) {
    %c0_i32 = arith.constant 0 : i32
    %c0_i32_0 = arith.constant 0 : i32
    %c0_i32_1 = arith.constant 0 : i32
    %c0_i32_2 = arith.constant 0 : i32
    return %c0_i32, %c0_i32_0, %c0_i32_1 : i32, i32, i32
  }
  func.func @transform_22(%arg0: i32) -> (i32, i32) {
    %c0_i32 = arith.constant 0 : i32
    %c0_i32_0 = arith.constant 0 : i32
    %c0_i32_1 = arith.constant 0 : i32
    return %c0_i32, %c0_i32_0 : i32, i32
  }
  func.func @transform_23(%arg0: i32) -> (i32, i32) {
    %c0_i32 = arith.constant 0 : i32
    %c0_i32_0 = arith.constant 0 : i32
    %c0_i32_1 = arith.constant 0 : i32
    return %c0_i32, %c0_i32_0 : i32, i32
  }
  func.func @transform_24(%arg0: i32) -> (i32, i32) {
    %c0_i32 = arith.constant 0 : i32
    %c0_i32_0 = arith.constant 0 : i32
    %c0_i32_1 = arith.constant 0 : i32
    return %c0_i32, %c0_i32_0 : i32, i32
  }
}

</mosaic_0001>

<bundles_post_ra>
// kernel: bert_custom_forward.1
= control target key start
LH: loop header
LB: loop body
LE: loop exit
PB: predicated region body
PF: predicated region fallthrough
CT: control target
= control target key end

     0   :  { %s3811_s0 = inlined_call_operand.vmem [shape: s32[2], index: 0, kind: input, shape index: {}]   ;;  %s3812_s1 = inlined_call_operand.vmem [shape: f32[16,32], index: 1, kind: input, shape index: {}]   ;;  %s3813_s2 = inlined_call_operand.vmem [shape: f32[2,8], index: 2, kind: input, shape index: {}]   ;;  %s3814_s3 = inlined_call_operand.vmem [shape: f32[1,32], index: 3, kind: input, shape index: {}]   ;;  %s3815_s4 = inlined_call_operand.vmem [shape: f32[1,32], index: 4, kind: input, shape index: {}]   ;;  %s3816_s5 = inlined_call_operand.vmem [shape: bf16[2,32,96], index: 5, kind: input, shape index: {}]   ;;  %s3817_s6 = inlined_call_operand.vmem [shape: f32[2,1,96], index: 6, kind: input, shape index: {}]   ;;  %s3818_s7 = inlined_call_operand.vmem [shape: bf16[2,32,32], index: 7, kind: input, shape index: {}]   ;;  %s3819_s8 = inlined_call_operand.vmem [shape: f32[2,1,32], index: 8, kind: input, shape index: {}]   ;;  %s3820_s9 = inlined_call_operand.vmem [shape: f32[2,1,32], index: 9, kind: input, shape index: {}]   ;;  %s3821_s10 = inlined_call_operand.vmem [shape: f32[2,1,32], index: 10, kind: input, shape index: {}]   ;;  %s3822_s11 = inlined_call_operand.vmem [shape: bf16[2,32,64], index: 11, kind: input, shape index: {}]   ;;  %s3823_s12 = inlined_call_operand.vmem [shape: f32[2,1,64], index: 12, kind: input, shape index: {}]   ;;  %s3824_s13 = inlined_call_operand.vmem [shape: bf16[2,64,32], index: 13, kind: input, shape index: {}]   ;;  %s3825_s14 = inlined_call_operand.vmem [shape: f32[2,1,32], index: 14, kind: input, shape index: {}]   ;;  %s3826_s15 = inlined_call_operand.vmem [shape: f32[2,1,32], index: 15, kind: input, shape index: {}]   ;;  %s3827_s16 = inlined_call_operand.vmem [shape: f32[2,1,32], index: 16, kind: input, shape index: {}]   ;;  %s3828_s17 = inlined_call_operand.vmem [shape: bf16[32,32], index: 17, kind: input, shape index: {}]   ;;  %s3829_s18 = inlined_call_operand.vmem [shape: f32[1,32], index: 18, kind: input, shape index: {}]   ;;  %s3830_s19 = inlined_call_operand.vmem [shape: bf16[32,3], index: 19, kind: input, shape index: {}]   ;;  %s3831_s20 = inlined_call_operand.vmem [shape: f32[1,3], index: 20, kind: input, shape index: {}]   ;;  %s3832_s21 = inlined_call_operand.vmem [shape: f32[8,8,8], index: 21, kind: output, shape index: {0}]   ;;  %s3833_s22 = inlined_call_operand.hbm [shape: f32[2,3], index: 22, kind: output, shape index: {1}]   ;;  %s3834_s23 = inlined_call_operand.hbm [shape: f32[2,32], index: 23, kind: output, shape index: {2}]   ;;  %s3835_s24 = inlined_call_operand.hbm [shape: f32[1,1], index: 24, kind: output, shape index: {3}]  }
   0x1   :  { %3846 = sst [smem:[#allocation12_spill]] %s3811_s0 }
   0x2   :  { %3847 = sst [smem:[#allocation13_spill]] %s3812_s1 }
   0x3   :  { %3848 = sst [smem:[#allocation14_spill]] %s3813_s2 }
   0x4   :  { %3849 = sst [smem:[#allocation15_spill]] %s3814_s3 }
   0x5   :  { %3850 = sst [smem:[#allocation16_spill]] %s3815_s4 }
   0x6   :  { %3851 = sst [smem:[#allocation17_spill]] %s3816_s5 }
   0x7   :  { %3852 = sst [smem:[#allocation18_spill]] %s3817_s6 }
   0x8   :  { %3853 = sst [smem:[#allocation19_spill]] %s3818_s7 }
   0x9   :  { %3854 = sst [smem:[#allocation20_spill]] %s3819_s8 }
   0xa   :  { %30 = vsyncpa [#allocation4], 0 }
   0xb   :  { %31 = vsyncpa [#allocation3], 0 }
   0xc   :  { %32 = vsyncpa [#allocation7], 0  ;;  %s3855_s27 = sld [smem:[#allocation12_spill]] }
  0x12   :  { %s39_s28 = sshll.u32 %s3855_s27, 4  ;;  %s40_s28 = int_to_ptr.vmem [resolvable:$true] %s39_s28 }
  0x13   :  { %s3108_s6 = scalar_lea.vmem %s40_s28, 16  ;;  %p3113_p1 = scmp.lt.s32.totalorder %s40_s28, %s40_s28 }
  0x14   :  { %p3109_p0 = scmp.ne.s32.totalorder %s40_s28, %s3108_s6  ;;  %p3114_p2 = scmp.lt.s32.totalorder %s3108_s6, %s3108_s6 }
  0x16   :  { %p3115_p3 = por %p3114_p2, %p3113_p1 }
  0x18   :  { %p3116_p4 = pnand %p3115_p3, %p3109_p0 }
  0x1a   :  { %3119 = shalt.err (!%p3116_p4)
}
  0x1b   :  { %s3192_s2 = smov [#allocation2]  }
  0x1c   :  { %42 = dma.vmem_to_smem %s40_s28, 16, %s3192_s2, [#allocation4]  }
  0x1d   :  { %3186 = dma.done.wait [#allocation4], 16  }
  0x1e   :  { %3187 = vsyncadd [#allocation4], 4294967280 }
  0x1f   :  { %86 = sfence }
  0x20   :  { %s3856_s7 = sld [smem:[#allocation13_spill]]  ;;  %vm92_vm0 = vcmask 261120   ;;  %s3857_s4 = sld [smem:[#allocation17_spill]]  ;;  %v3193_v15 = vmov 0.0   ;;  %vm3194_vm1 = vmmov 0   ;;  %vm210_vm2 = vcmask 130048  }
  0x21   :  { %2817 = vmatprep.subr.bf16.mxu0 %v3193_v15  ;;  %2825 = vmatprep.subr.mxu1 %v3193_v15  ;;  %s3858_s28 = sld [smem:[#allocation15_spill]]  ;;  %s3859_s29 = sld [smem:[#allocation16_spill]]  ;;  %v286_v42 = vlaneseq  ;;  %vm291_vm3 = vcmask 64512   ;;  %vm1140_vm4 = vcmask 523264   ;;  %vm2474_vm6 = vcmask 254976  }
  0x22   :  { %2821 = vmatprep.mubr.msk.bf16.mxu0 %vm3194_vm1, %v3193_v15  ;;  %2827 = vmatprep.mubr.msk.f32.mxu1 %vm3194_vm1, %v3193_v15  ;;  %s3860_s30 = sld [smem:[#allocation18_spill]]  ;;  %s3195_s3 = smov 96   ;;  %vm2543_vm10 = vcmask 17408  }
  0x23   :  { %s3196_s25 = smov 80   ;;  %s3197_s8 = smov 112   ;;  %v3397_v45 = vshrl.u32 %v286_v42, 7 }
  0x24   :  { %s3861_s26 = sld [smem:[#allocation14_spill]]  ;;  %s3844_s27 = smov 64  }
  0x25   :  { %v288_v47 = vsub.s32 0, %v3397_v45  ;;  %s3842_s2 = smov 48   ;;  %s3841_s1 = smov 16   ;;  %vm2557_vm7 = vcmp.eq.s32.totalorder %v3397_v45, 0  ;;  %vm2561_vm8 = vcmp.eq.s32.totalorder %v3397_v45, 1 }
  0x26   :  { %v88_v0 = vld [vmem:[%s3856_s7] sm:$0xff]  ;;  %v89_v1 = vld [vmem:[%s3856_s7 + $0x8] sm:$0xff] }
  0x27   :  { %v93_v2 = vsel %vm92_vm0, %v88_v0, 0.0  ;;  %v96_v3 = vsel %vm92_vm0, %v89_v1, 0.0  ;;  %v3018_v14 = vld [vmem:[%s3857_s4] sm:$0xff]   ;;  %v3019_v16 = vld [vmem:[%s3857_s4 + $0x8] sm:$0xff]  }
  0x28   :  { %94 = vadd.xlane.f32.xlu0 %v93_v2  ;;  %2818 = vmatpush3.bf16.msra.mxu0 %v3018_v14  ;;  %v2631_v25 = vld [vmem:[%s3858_s28] ss:$0 sm:$0xff]  ;;  %s3863_s28 = sld [smem:[#allocation20_spill]] }
  0x29   :  { %2819 = vmatprep.subr.bf16.mxu0 %v3193_v15  ;;  %v2632_v29 = vld [vmem:[%s3859_s29] ss:$0 sm:$0xff]  ;;  %s3862_s29 = sld [smem:[#allocation19_spill]] }
  0x2a   :  { %v2633_v34 = vld [vmem:[%s3860_s30] ss:$0 sm:$0xff] }
  0x2b   :  { %v136_v43 = vld [vmem:[%s3861_s26] sm:$0x3] }
  0x2c   :  { %97 = vadd.xlane.f32.xlu0 %v96_v3  ;;  %2820 = vmatpush3.bf16.msra.mxu0 %v3019_v16  ;;  %v137_v44 = vsub.f32 1.0, %v136_v43 }
  0x2d   :  { %2840 = vmatprep.subr.mxu0 %v3193_v15 }
  0x2e   :  { %v138_v46 = vmul.f32 -1e+09, %v137_v44 }
  0x30   :  { %v3400_v48 = vrot.slane %v138_v46, %v288_v47 }
  0xb5   :  { %v95_v4 = vpop.xlane.xlu0 %94 }
  0xb6   :  { %v100_v5 = vmul.f32 0.03125, %v95_v4 }
  0xb8   :  { %v102_v6 = vsub.f32 %v88_v0, %v100_v5 }
  0xb9   :  { %v98_v7 = vpop.xlane.xlu0 %97 }
  0xba   :  { %v101_v8 = vmul.f32 0.03125, %v98_v7  ;;  %v104_v9 = vmul.f32 %v102_v6, %v102_v6 }
  0xbc   :  { %v103_v10 = vsub.f32 %v89_v1, %v101_v8  ;;  %v106_v11 = vsel %vm92_vm0, %v104_v9, 0.0 }
  0xbd   :  { %107 = vadd.xlane.f32.xlu1 %v106_v11 }
  0xbe   :  { %v105_v12 = vmul.f32 %v103_v10, %v103_v10 }
  0xc0   :  { %v109_v13 = vsel %vm92_vm0, %v105_v12, 0.0 }
  0xc1   :  { %110 = vadd.xlane.f32.xlu1 %v109_v13 }
 0x14a   :  { %v108_v17 = vpop.xlane.xlu1 %107 }
 0x14b   :  { %v112_v18 = vmul.f32 0.03125, %v108_v17 }
 0x14d   :  { %v114_v19 = vadd.f32 1e-12, %v112_v18 }
 0x14e   :  { %v111_v20 = vpop.xlane.xlu1 %110 }
 0x14f   :  { %3042 = vrsqrt.f32 %v114_v19  ;;  %v113_v21 = vmul.f32 0.03125, %v111_v20 }
 0x151   :  { %v115_v22 = vadd.f32 1e-12, %v113_v21 }
 0x153   :  { %3044 = vrsqrt.f32 %v115_v22 }
 0x159   :  { %v3043_v23 = vpop.eup %3042 }
 0x15a   :  { %v118_v24 = vmul.f32 %v3043_v23, %v102_v6  ;;  %v634_v6 = vsub.s32 1, %v3397_v45 }
 0x15c   :  { %v126_v28 = vmul.f32 %v2631_v25, %v118_v24  ;;  %v3439_v11 = vrot.slane %v138_v46, %v634_v6 }
 0x15d   :  { %v3045_v26 = vpop.eup %3044 }
 0x15e   :  { %v119_v27 = vmul.f32 %v3045_v26, %v103_v10  ;;  %v3363_v31 = vadd.f32 %v2632_v29, %v126_v28 }
 0x160   :  { %v127_v30 = vmul.f32 %v2631_v25, %v119_v27 }
 0x162   :  { %v3365_v32 = vadd.f32 %v2632_v29, %v127_v30 }
 0x164   :  { %v139_v33 = vpack.c.bf16 %v3365_v32, %v3363_v31 }
 0x166   :  { %2822 = vmatmul.mubr.msk.bf16.vlgmr.msra.gmra.mrb[0].mxu0 %vm92_vm0, %v139_v33 }
 0x167   :  { %2842 = vmatprep.mubr.msk.f32.mxu0 %vm3194_vm1, %v3193_v15 }
 0x239   :  { %v200_v35 = vpop.f32.mrb[0].mxu0 }
 0x23a   :  { %v3375_v36 = vadd.f32 %v2633_v34, %v200_v35  ;;  %v2823_v37 = vpop.f32.mrb[1].mxu0 }
 0x23b   :  { %v203_v38 = vpop.f32.mrb[2].mxu0 }
 0x23c   :  { %208 = vrot.lane.b32.xlu0 %v3375_v36, %s3195_s3  ;;  %v2824_v39 = vpop.f32.mrb[3].mxu0  ;;  %v3381_v40 = vadd.f32 %v2633_v34, %v203_v38 }
 0x240   :  { %382 = vrot.lane.b32.xlu0 %v3375_v36, %s3196_s25 }
 0x244   :  { %555 = vrot.lane.b32.xlu0 %v3381_v40, %s3195_s3 }
 0x248   :  { %726 = vrot.lane.b32.xlu0 %v3381_v40, %s3197_s8 }
 0x2ae   :  { %v209_v41 = vpop.permute.xlu0 %208 }
 0x2af   :  { %2826 = vmatpush3.xpose.msk.msra.mxu1 %vm210_vm2, %v209_v41 }
 0x2b0   :  { %2830 = vmatprep.subr.mxu1 %v3193_v15 }
 0x2b2   :  { %2828 = vmatmul.mubr.msk.f32.vlgmr.msra.gmra.mrb[0].mxu1 %vm210_vm2, %v3375_v36  ;;  %v383_v63 = vpop.permute.xlu0 %382 }
 0x2b3   :  { %2832 = vmatprep.mubr.msk.f32.mxu1 %vm3194_vm1, %v3193_v15 }
 0x2b6   :  { %v556_v1 = vpop.permute.xlu0 %555 }
 0x2ba   :  { %v727_v3 = vpop.permute.xlu0 %726 }
 0x385   :  { %v281_v49 = vpop.f32.mrb[0].mxu1 }
 0x386   :  { %v285_v50 = vmul.f32 0.25, %v281_v49  ;;  %v2829_v51 = vpop.f32.mrb[1].mxu1 }
 0x388   :  { %v290_v52 = vadd.f32 %v3400_v48, %v285_v50 }
 0x38a   :  { %v292_v53 = vsel %vm291_vm3, %v290_v52, -inf }
 0x38b   :  { %293 = vmax.xlane.f32.xlu1 %v292_v53 }
 0x39c   :  { %304 = vrot.lane.b32.xlu1 %v3375_v36, %s3844_s27 }
 0x3a0   :  { %380 = vrot.lane.b32.xlu1 %v3375_v36, %s3197_s8 }
 0x418   :  { %v294_v54 = vpop.xlane.xlu1 %293 }
 0x419   :  { %v295_v55 = vsub.f32 %v290_v52, %v294_v54 }
 0x41b   :  { %v296_v56 = vmul.f32 1.442695, %v295_v55 }
 0x41c   :  { %v305_v57 = vpop.permute.xlu1 %304 }
 0x41d   :  { %3046 = vpow2.f32 %v296_v56  ;;  %2831 = vmatpush3.msra.mxu1 %v305_v57  ;;  %v3020_v56 = vld [vmem:[%s3862_s29] sm:$0xff]   ;;  %v3021_v57 = vld [vmem:[%s3862_s29 + $0x8] sm:$0xff]  }
 0x41e   :  { %2835 = vmatprep.subr.mxu1 %v3193_v15 }
 0x420   :  { %v381_v60 = vpop.permute.xlu1 %380 }
 0x427   :  { %v3047_v58 = vpop.eup %3046 }
 0x428   :  { %v298_v59 = vsel %vm291_vm3, %v3047_v58, 0.0 }
 0x429   :  { %299 = vadd.xlane.f32.xlu1 %v298_v59 }
 0x43a   :  { %728 = vrot.lane.b32.xlu1 %v3381_v40, %s3196_s25 }
 0x4b6   :  { %v300_v61 = vpop.xlane.xlu1 %299 }
 0x4b7   :  { %3048 = vrcp.f32 %v300_v61 }
 0x4ba   :  { %v729_v2 = vpop.permute.xlu1 %728 }
 0x4c1   :  { %v3049_v62 = vpop.eup %3048 }
 0x4c2   :  { %v302_v0 = vmul.f32 %v3049_v62, %v3047_v58 }
 0x4c4   :  { %303 = vst.msk [vmem:[%s3832_s21] sm:$0xff] %vm291_vm3, %v302_v0  ;;  %2833 = vmatmul.mubr.msk.f32.vlgmr.msra.gmra.mrb[2].mxu1 %vm291_vm3, %v302_v0 }
 0x4c5   :  { %2836 = vmatpush3.xpose.msk.msra.mxu1 %vm210_vm2, %v383_v63  ;;  %2837 = vmatprep.mubr.msk.f32.mxu1 %vm3194_vm1, %v3193_v15 }
 0x4c6   :  { %2845 = vmatprep.subr.mxu1 %v3193_v15 }
 0x4c8   :  { %2838 = vmatmul.mubr.msk.f32.vlgmr.msra.gmra.mrb[4].mxu1 %vm210_vm2, %v381_v60 }
 0x4c9   :  { %2846 = vmatpush3.xpose.msk.msra.mxu1 %vm210_vm2, %v556_v1  ;;  %2847 = vmatprep.mubr.msk.f32.mxu1 %vm3194_vm1, %v3193_v15 }
 0x4ca   :  { %2855 = vmatprep.subr.mxu1 %v3193_v15 }
 0x4cc   :  { %2848 = vmatmul.mubr.msk.f32.vlgmr.msra.gmra.mrb[6].mxu1 %vm210_vm2, %v3381_v40 }
 0x4cd   :  { %2856 = vmatpush3.xpose.msk.msra.mxu1 %vm210_vm2, %v729_v2  ;;  %2857 = vmatprep.mubr.msk.f32.mxu1 %vm3194_vm1, %v3193_v15 }
 0x4ce   :  { %2865 = vmatprep.subr.bf16.mxu1 %v3193_v15 }
 0x4d0   :  { %2858 = vmatmul.mubr.msk.f32.vlgmr.msra.gmra.mrb[8].mxu1 %vm210_vm2, %v727_v3 }
 0x4d1   :  { %2869 = vmatprep.mubr.msk.bf16.mxu1 %vm3194_vm1, %v3193_v15  ;;  %2866 = vmatpush3.bf16.msra.mxu1 %v3020_v56  ;;  %v2658_v56 = vld [vmem:[%s3823_s12] ss:$0 sm:$0xff] }
 0x4d2   :  { %2867 = vmatprep.subr.bf16.mxu1 %v3193_v15 }
 0x4d5   :  { %2868 = vmatpush3.bf16.msra.mxu1 %v3021_v57 }
 0x4d6   :  { %2881 = vmatprep.subr.bf16.mxu1 %v3193_v15 }
 0x597   :  { %v3435_v4 = vpop.f32.mrb[2].mxu1 }
 0x598   :  { %v2834_v5 = vpop.f32.mrb[3].mxu1 }
 0x59b   :  { %v454_v7 = vpop.f32.mrb[4].mxu1 }
 0x59c   :  { %v458_v8 = vmul.f32 0.25, %v454_v7  ;;  %v2839_v9 = vpop.f32.mrb[5].mxu1 }
 0x59e   :  { %v459_v10 = vadd.f32 %v458_v8, %v3400_v48  ;;  %v2652_v8 = vld [vmem:[%s3863_s28] ss:$0 sm:$0xff] }
 0x59f   :  { %v627_v12 = vpop.f32.mrb[6].mxu1 }
 0x5a0   :  { %v631_v13 = vmul.f32 0.25, %v627_v12  ;;  %v2849_v14 = vpop.f32.mrb[7].mxu1  ;;  %v460_v16 = vsel %vm291_vm3, %v459_v10, -inf }
 0x5a1   :  { %461 = vmax.xlane.f32.xlu1 %v460_v16 }
 0x5a2   :  { %v636_v17 = vadd.f32 %v3439_v11, %v631_v13 }
 0x5a3   :  { %v800_v18 = vpop.f32.mrb[8].mxu1 }
 0x5a4   :  { %v804_v19 = vmul.f32 0.25, %v800_v18  ;;  %v2859_v20 = vpop.f32.mrb[9].mxu1  ;;  %v637_v21 = vsel %vm291_vm3, %v636_v17, -inf }
 0x5a5   :  { %638 = vmax.xlane.f32.xlu0 %v637_v21 }
 0x5a6   :  { %v805_v22 = vadd.f32 %v804_v19, %v3439_v11 }
 0x5a8   :  { %v806_v23 = vsel %vm291_vm3, %v805_v22, -inf }
 0x5a9   :  { %807 = vmax.xlane.f32.xlu0 %v806_v23 }
 0x5b2   :  { %473 = vrot.lane.b32.xlu1 %v3375_v36, %s3842_s2 }
 0x62e   :  { %v462_v24 = vpop.xlane.xlu1 %461 }
 0x62f   :  { %v463_v25 = vsub.f32 %v459_v10, %v462_v24 }
 0x631   :  { %v464_v26 = vmul.f32 1.442695, %v463_v25 }
 0x632   :  { %v474_v27 = vpop.permute.xlu1 %473  ;;  %v639_v28 = vpop.xlane.xlu0 %638 }
 0x633   :  { %3050 = vpow2.f32 %v464_v26  ;;  %v640_v29 = vsub.f32 %v636_v17, %v639_v28  ;;  %2841 = vmatpush3.msra.mxu0 %v474_v27 }
 0x634   :  { %2850 = vmatprep.subr.mxu0 %v3193_v15 }
 0x635   :  { %v641_v30 = vmul.f32 1.442695, %v640_v29  ;;  %v3023_v29 = vld [vmem:[%s3822_s11 + $0x8] sm:$0xff]  }
 0x636   :  { %v808_v33 = vpop.xlane.xlu0 %807 }
 0x637   :  { %3052 = vpow2.f32 %v641_v30  ;;  %v809_v34 = vsub.f32 %v805_v22, %v808_v33 }
 0x639   :  { %v810_v35 = vmul.f32 1.442695, %v809_v34 }
 0x63b   :  { %3054 = vpow2.f32 %v810_v35 }
 0x63d   :  { %v3051_v37 = vpop.eup %3050 }
 0x63e   :  { %v466_v38 = vsel %vm291_vm3, %v3051_v37, 0.0 }
 0x63f   :  { %467 = vadd.xlane.f32.xlu0 %v466_v38 }
 0x641   :  { %v3053_v36 = vpop.eup %3052 }
 0x642   :  { %v643_v39 = vsel %vm291_vm3, %v3053_v36, 0.0 }
 0x643   :  { %644 = vadd.xlane.f32.xlu1 %v643_v39 }
 0x645   :  { %v3055_v41 = vpop.eup %3054 }
 0x646   :  { %v812_v43 = vsel %vm291_vm3, %v3055_v41, 0.0 }
 0x647   :  { %813 = vadd.xlane.f32.xlu0 %v812_v43 }
 0x654   :  { %819 = vrot.lane.b32.xlu1 %v3381_v40, %s3842_s2 }
 0x65d   :  { %650 = vrot.lane.b32.xlu0 %v3381_v40, %s3844_s27 }
 0x6cc   :  { %v468_v44 = vpop.xlane.xlu0 %467 }
 0x6cd   :  { %3056 = vrcp.f32 %v468_v44 }
 0x6d0   :  { %v645_v46 = vpop.xlane.xlu1 %644 }
 0x6d1   :  { %3058 = vrcp.f32 %v645_v46 }
 0x6d4   :  { %v814_v47 = vpop.xlane.xlu0 %813  ;;  %v820_v53 = vpop.permute.xlu1 %819 }
 0x6d5   :  { %3060 = vrcp.f32 %v814_v47  ;;  %v2657_v47 = vld [vmem:[%s3821_s10] ss:$0 sm:$0xff] }
 0x6d7   :  { %v3057_v49 = vpop.eup %3056 }
 0x6d8   :  { %v470_v50 = vmul.f32 %v3057_v49, %v3051_v37  ;;  %v651_v51 = vpop.permute.xlu0 %650 }
 0x6da   :  { %2642 = vst.msk [vmem:[%s3832_s21 + $0x8] sm:$0xff] %vm291_vm3, %v470_v50  ;;  %2843 = vmatmul.mubr.msk.f32.vlgmr.msra.gmra.mrb[4].mxu0 %vm291_vm3, %v470_v50 }
 0x6db   :  { %v3059_v52 = vpop.eup %3058  ;;  %2851 = vmatpush3.msra.mxu0 %v651_v51  ;;  %2852 = vmatprep.mubr.msk.f32.mxu0 %vm3194_vm1, %v3193_v15 }
 0x6dc   :  { %v647_v40 = vmul.f32 %v3059_v52, %v3053_v36  ;;  %2860 = vmatprep.subr.mxu0 %v3193_v15 }
 0x6de   :  { %2646 = vst.msk [vmem:[%s3832_s21 + $0x10] sm:$0xff] %vm291_vm3, %v647_v40  ;;  %2853 = vmatmul.mubr.msk.f32.vlgmr.msra.gmra.mrb[6].mxu0 %vm291_vm3, %v647_v40  ;;  %v3024_v40 = vld [vmem:[%s3824_s13] sm:$0xff]  }
 0x6df   :  { %v3061_v54 = vpop.eup %3060  ;;  %2861 = vmatpush3.msra.mxu0 %v820_v53  ;;  %2862 = vmatprep.mubr.msk.f32.mxu0 %vm3194_vm1, %v3193_v15  ;;  %v3025_v53 = vld [vmem:[%s3824_s13 + $0x8] sm:$0xff]  }
 0x6e0   :  { %v816_v55 = vmul.f32 %v3061_v54, %v3055_v41  ;;  %2873 = vmatprep.subr.bf16.mxu0 %v3193_v15  ;;  %v2656_v41 = vld [vmem:[%s3820_s9] ss:$0 sm:$0xff]  ;;  %v3026_v54 = vld [vmem:[%s3824_s13 + $0x10] sm:$0xff]  }
 0x6e2   :  { %2650 = vst.msk [vmem:[%s3832_s21 + $0x18] sm:$0xff] %vm291_vm3, %v816_v55  ;;  %2863 = vmatmul.mubr.msk.f32.vlgmr.msra.gmra.mrb[8].mxu0 %vm291_vm3, %v816_v55  ;;  %v3027_v55 = vld [vmem:[%s3824_s13 + $0x18] sm:$0xff]  }
 0x6e3   :  { %2877 = vmatprep.mubr.msk.bf16.mxu0 %vm3194_vm1, %v3193_v15 }
 0x7ad   :  { %v545_v58 = vpop.f32.mrb[4].mxu0 }
 0x7ae   :  { %v2844_v59 = vpop.f32.mrb[5].mxu0 }
 0x7b1   :  { %v722_v60 = vpop.f32.mrb[6].mxu0 }
 0x7b2   :  { %v2854_v61 = vpop.f32.mrb[7].mxu0 }
 0x7b5   :  { %v891_v62 = vpop.f32.mrb[8].mxu0 }
 0x7b6   :  { %v3008_v63 = vpack.i.bf16 %v891_v62, %v545_v58  ;;  %v2864_v0 = vpop.f32.mrb[9].mxu0 }
 0x7b8   :  { %3009 = vrot.lane.b32.xlu1 %v3008_v63, %s3841_s1 }
 0x82a   :  { %v3010_v1 = vpop.permute.xlu1 %3009 }
 0x82b   :  { %v3012_v2 = vunpack.i.h.bf16 %v3010_v1  ;;  %v3011_v3 = vunpack.i.l.bf16 %v3010_v1 }
 0x82d   :  { %v899_v5 = vsel %vm210_vm2, %v722_v60, %v3012_v2  ;;  %v553_v6 = vsel %vm210_vm2, %v3435_v4, %v3011_v3 }
 0x82e   :  { %v900_v7 = vpack.c.bf16 %v899_v5, %v553_v6 }
 0x830   :  { %2870 = vmatmul.mubr.msk.bf16.vlgmr.msra.gmra.mrb[12].mxu1 %vm92_vm0, %v900_v7 }
 0x831   :  { %2889 = vmatprep.mubr.msk.bf16.mxu1 %vm3194_vm1, %v3193_v15  ;;  %2882 = vmatpush3.bf16.msra.mxu1 %v3024_v40 }
 0x832   :  { %2883 = vmatprep.subr.bf16.mxu1 %v3193_v15 }
 0x835   :  { %2884 = vmatpush3.bf16.msra.mxu1 %v3025_v53  ;;  %v2668_v53 = vld [vmem:[%s3826_s15] ss:$0 sm:$0xff] }
 0x836   :  { %2885 = vmatprep.subr.bf16.mxu1 %v3193_v15 }
 0x839   :  { %2886 = vmatpush3.bf16.msra.mxu1 %v3026_v54 }
 0x83a   :  { %2887 = vmatprep.subr.bf16.mxu1 %v3193_v15 }
 0x83d   :  { %2888 = vmatpush3.bf16.msra.mxu1 %v3027_v55 }
 0x83e   :  { %2911 = vmatprep.subr.mxu1 %v3193_v15 }
 0x903   :  { %v961_v9 = vpop.f32.mrb[12].mxu1 }
 0x904   :  { %v962_v10 = vadd.f32 %v2652_v8, %v961_v9  ;;  %v2871_v12 = vpop.f32.mrb[13].mxu1 }
 0x905   :  { %v964_v13 = vpop.f32.mrb[14].mxu1 }
 0x906   :  { %v965_v14 = vadd.f32 %v2652_v8, %v964_v13  ;;  %v2872_v16 = vpop.f32.mrb[15].mxu1  ;;  %v968_v17 = vadd.f32 %v962_v10, %v3363_v31 }
 0x908   :  { %v972_v4 = vsel %vm92_vm0, %v968_v17, 0.0  ;;  %v969_v18 = vadd.f32 %v965_v14, %v3365_v32  ;;  %v3022_v32 = vld [vmem:[%s3822_s11] sm:$0xff]  }
 0x909   :  { %973 = vadd.xlane.f32.xlu1 %v972_v4  ;;  %2874 = vmatpush3.bf16.msra.mxu0 %v3022_v32 }
 0x90a   :  { %v975_v19 = vsel %vm92_vm0, %v969_v18, 0.0  ;;  %2875 = vmatprep.subr.bf16.mxu0 %v3193_v15 }
 0x90b   :  { %976 = vadd.xlane.f32.xlu0 %v975_v19 }
 0x90d   :  { %2876 = vmatpush3.bf16.msra.mxu0 %v3023_v29 }
 0x90e   :  { %2893 = vmatprep.subr.bf16.mxu0 %v3193_v15 }
 0x996   :  { %v974_v20 = vpop.xlane.xlu1 %973 }
 0x997   :  { %v978_v21 = vmul.f32 0.03125, %v974_v20  ;;  %v2662_v20 = vld [vmem:[%s3825_s14] ss:$0 sm:$0xff] }
 0x998   :  { %v977_v22 = vpop.xlane.xlu0 %976 }
 0x999   :  { %v980_v23 = vsub.f32 %v968_v17, %v978_v21  ;;  %v979_v24 = vmul.f32 0.03125, %v977_v22 }
 0x99b   :  { %v981_v25 = vsub.f32 %v969_v18, %v979_v24  ;;  %v982_v26 = vmul.f32 %v980_v23, %v980_v23 }
 0x99d   :  { %v984_v27 = vsel %vm92_vm0, %v982_v26, 0.0  ;;  %v983_v28 = vmul.f32 %v981_v25, %v981_v25 }
 0x99e   :  { %985 = vadd.xlane.f32.xlu0 %v984_v27 }
 0x99f   :  { %v987_v31 = vsel %vm92_vm0, %v983_v28, 0.0 }
 0x9a2   :  { %988 = vadd.xlane.f32.xlu0 %v987_v31 }
 0xa2b   :  { %v986_v30 = vpop.xlane.xlu0 %985 }
 0xa2c   :  { %v990_v33 = vmul.f32 0.03125, %v986_v30 }
 0xa2e   :  { %v992_v34 = vadd.f32 1e-12, %v990_v33 }
 0xa2f   :  { %v989_v35 = vpop.xlane.xlu0 %988 }
 0xa30   :  { %3062 = vrsqrt.f32 %v992_v34  ;;  %v991_v37 = vmul.f32 0.03125, %v989_v35 }
 0xa32   :  { %v993_v38 = vadd.f32 1e-12, %v991_v37 }
 0xa34   :  { %3064 = vrsqrt.f32 %v993_v38 }
 0xa3a   :  { %v3063_v36 = vpop.eup %3062 }
 0xa3b   :  { %v996_v39 = vmul.f32 %v3063_v36, %v980_v23 }
 0xa3d   :  { %v1004_v44 = vmul.f32 %v2656_v41, %v996_v39 }
 0xa3e   :  { %v3065_v43 = vpop.eup %3064 }
 0xa3f   :  { %v997_v46 = vmul.f32 %v3065_v43, %v981_v25  ;;  %v1012_v50 = vadd.f32 %v2657_v47, %v1004_v44  ;;  %v3028_v43 = vld [vmem:[%s3857_s4 + $0x10] sm:$0xff]   ;;  %v3029_v44 = vld [vmem:[%s3857_s4 + $0x18] sm:$0xff]   ;;  %s2746_s4 = sld [smem:[#allocation2 + $0x1]] }
 0xa41   :  { %v1005_v49 = vmul.f32 %v2656_v41, %v997_v46 }
 0xa43   :  { %v1013_v51 = vadd.f32 %v2657_v47, %v1005_v49 }
 0xa45   :  { %v1014_v52 = vpack.c.bf16 %v1013_v51, %v1012_v50 }
 0xa47   :  { %2878 = vmatmul.mubr.msk.bf16.vlgmr.msra.gmra.mrb[12].mxu0 %vm92_vm0, %v1014_v52 }
 0xa48   :  { %2897 = vmatprep.mubr.msk.bf16.mxu0 %vm3194_vm1, %v3193_v15  ;;  %2894 = vmatpush3.bf16.msra.mxu0 %v3028_v43 }
 0xa49   :  { %2895 = vmatprep.subr.bf16.mxu0 %v3193_v15 }
 0xa4c   :  { %2896 = vmatpush3.bf16.msra.mxu0 %v3029_v44 }
 0xa4d   :  { %2901 = vmatprep.subr.mxu0 %v3193_v15 }
 0xb1a   :  { %v1075_v57 = vpop.f32.mrb[12].mxu0 }
 0xb1b   :  { %v1076_v58 = vadd.f32 %v2658_v56, %v1075_v57  ;;  %v2879_v59 = vpop.f32.mrb[13].mxu0 }
 0xb1c   :  { %v1078_v60 = vpop.f32.mrb[14].mxu0 }
 0xb1d   :  { %v1084_v61 = vmul.f32 0.044715, %v1076_v58  ;;  %v1079_v62 = vadd.f32 %v2658_v56, %v1078_v60  ;;  %v2880_v63 = vpop.f32.mrb[15].mxu0  ;;  %v1082_v14 = vmul.f32 0.5, %v1076_v58 }
 0xb1e   :  { %v2675_v63 = vld [vmem:[%s3860_s30 + $0x1] ss:$0 sm:$0xff]  ;;  %s3864_s30 = smov 64  }
 0xb1f   :  { %v1086_v0 = vmul.f32 %v1084_v61, %v1076_v58  ;;  %v1085_v1 = vmul.f32 0.044715, %v1079_v62  ;;  %v1083_v16 = vmul.f32 0.5, %v1079_v62 }
 0xb21   :  { %v1088_v2 = vmul.f32 %v1086_v0, %v1076_v58  ;;  %v1087_v3 = vmul.f32 %v1085_v1, %v1079_v62 }
 0xb23   :  { %v1090_v5 = vadd.f32 %v1088_v2, %v1076_v58  ;;  %v1089_v6 = vmul.f32 %v1087_v3, %v1079_v62  ;;  %v2669_v58 = vld [vmem:[%s3827_s16] ss:$0 sm:$0xff] }
 0xb25   :  { %v1092_v7 = vmul.f32 0.7978846, %v1090_v5  ;;  %v1091_v8 = vadd.f32 %v1089_v6, %v1079_v62 }
 0xb27   :  { %3066 = vtanh.f32 %v1092_v7  ;;  %v1093_v9 = vmul.f32 0.7978846, %v1091_v8 }
 0xb29   :  { %3068 = vtanh.f32 %v1093_v9 }
 0xb31   :  { %v3067_v10 = vpop.eup %3066 }
 0xb32   :  { %v1096_v12 = vadd.f32 1.0, %v3067_v10 }
 0xb33   :  { %v3069_v13 = vpop.eup %3068 }
 0xb34   :  { %v1097_v17 = vadd.f32 1.0, %v3069_v13  ;;  %v1098_v4 = vmul.f32 %v1096_v12, %v1082_v14 }
 0xb36   :  { %v1099_v18 = vmul.f32 %v1097_v17, %v1083_v16 }
 0xb38   :  { %v1100_v19 = vpack.c.bf16 %v1099_v18, %v1098_v4 }
 0xb3a   :  { %2890 = vmatmul.mubr.msk.bf16.vlgmr.msra.gmra.mrb[16].mxu1 %vm1140_vm4, %v1100_v19 }
 0xb3b   :  { %2913 = vmatprep.mubr.msk.f32.mxu1 %vm3194_vm1, %v3193_v15 }
 0xc0d   :  { %v1178_v21 = vpop.f32.mrb[16].mxu1 }
 0xc0e   :  { %v1179_v22 = vadd.f32 %v2662_v20, %v1178_v21  ;;  %v2891_v23 = vpop.f32.mrb[17].mxu1 }
 0xc0f   :  { %v1181_v24 = vpop.f32.mrb[18].mxu1 }
 0xc10   :  { %v1182_v25 = vadd.f32 %v2662_v20, %v1181_v24  ;;  %v2892_v26 = vpop.f32.mrb[19].mxu1  ;;  %v1185_v27 = vadd.f32 %v1179_v22, %v1012_v50 }
 0xc12   :  { %v1189_v28 = vsel %vm92_vm0, %v1185_v27, 0.0  ;;  %v1186_v31 = vadd.f32 %v1182_v25, %v1013_v51 }
 0xc13   :  { %1190 = vadd.xlane.f32.xlu1 %v1189_v28 }
 0xc14   :  { %v1192_v32 = vsel %vm92_vm0, %v1186_v31, 0.0 }
 0xc15   :  { %1193 = vadd.xlane.f32.xlu0 %v1192_v32 }
 0xca0   :  { %v1191_v29 = vpop.xlane.xlu1 %1190 }
 0xca1   :  { %v1195_v30 = vmul.f32 0.03125, %v1191_v29 }
 0xca2   :  { %v1194_v33 = vpop.xlane.xlu0 %1193 }
 0xca3   :  { %v1197_v34 = vsub.f32 %v1185_v27, %v1195_v30  ;;  %v1196_v35 = vmul.f32 0.03125, %v1194_v33 }
 0xca5   :  { %v1198_v37 = vsub.f32 %v1186_v31, %v1196_v35  ;;  %v1199_v38 = vmul.f32 %v1197_v34, %v1197_v34 }
 0xca7   :  { %v1201_v36 = vsel %vm92_vm0, %v1199_v38, 0.0  ;;  %v1200_v39 = vmul.f32 %v1198_v37, %v1198_v37 }
 0xca8   :  { %1202 = vadd.xlane.f32.xlu1 %v1201_v36 }
 0xca9   :  { %v1204_v41 = vsel %vm92_vm0, %v1200_v39, 0.0 }
 0xcaa   :  { %1205 = vadd.xlane.f32.xlu0 %v1204_v41 }
 0xd35   :  { %v1203_v46 = vpop.xlane.xlu1 %1202 }
 0xd36   :  { %v1207_v47 = vmul.f32 0.03125, %v1203_v46 }
 0xd37   :  { %v1206_v49 = vpop.xlane.xlu0 %1205 }
 0xd38   :  { %v1209_v50 = vadd.f32 1e-12, %v1207_v47  ;;  %v1208_v51 = vmul.f32 0.03125, %v1206_v49 }
 0xd3a   :  { %3070 = vrsqrt.f32 %v1209_v50  ;;  %v1210_v52 = vadd.f32 1e-12, %v1208_v51 }
 0xd3c   :  { %3072 = vrsqrt.f32 %v1210_v52 }
 0xd44   :  { %v3071_v40 = vpop.eup %3070 }
 0xd45   :  { %v1213_v54 = vmul.f32 %v3071_v40, %v1197_v34 }
 0xd46   :  { %v3073_v55 = vpop.eup %3072 }
 0xd47   :  { %v1221_v56 = vmul.f32 %v2668_v53, %v1213_v54  ;;  %v1214_v57 = vmul.f32 %v3073_v55, %v1198_v37 }
 0xd49   :  { %v1222_v59 = vmul.f32 %v2668_v53, %v1214_v57  ;;  %v3563_v60 = vadd.f32 %v2669_v58, %v1221_v56 }
 0xd4b   :  { %v3565_v61 = vadd.f32 %v2669_v58, %v1222_v59 }
 0xd4d   :  { %v1231_v62 = vpack.c.bf16 %v3565_v61, %v3563_v60 }
 0xd4f   :  { %2898 = vmatmul.mubr.msk.bf16.vlgmr.msra.gmra.mrb[16].mxu0 %vm92_vm0, %v1231_v62 }
 0xd50   :  { %2903 = vmatprep.mubr.msk.f32.mxu0 %vm3194_vm1, %v3193_v15 }
 0xe22   :  { %v1294_v0 = vpop.f32.mrb[16].mxu0 }
 0xe23   :  { %v3575_v1 = vadd.f32 %v2675_v63, %v1294_v0  ;;  %v2899_v2 = vpop.f32.mrb[17].mxu0 }
 0xe24   :  { %v1297_v3 = vpop.f32.mrb[18].mxu0 }
 0xe25   :  { %1471 = vrot.lane.b32.xlu0 %v3575_v1, %s3196_s25  ;;  %1302 = vrot.lane.b32.xlu1 %v3575_v1, %s3195_s3  ;;  %v2900_v5 = vpop.f32.mrb[19].mxu0  ;;  %v3581_v6 = vadd.f32 %v2675_v63, %v1297_v3 }
 0xe29   :  { %1469 = vrot.lane.b32.xlu1 %v3575_v1, %s3197_s8  ;;  %1811 = vrot.lane.b32.xlu0 %v3581_v6, %s3197_s8 }
 0xe2d   :  { %1644 = vrot.lane.b32.xlu1 %v3581_v6, %s3195_s3  ;;  %s3865_s3 = smov 48  }
 0xe31   :  { %1813 = vrot.lane.b32.xlu1 %v3581_v6, %s3196_s25 }
 0xe97   :  { %v1472_v7 = vpop.permute.xlu0 %1471  ;;  %v1303_v8 = vpop.permute.xlu1 %1302 }
 0xe98   :  { %2902 = vmatpush3.xpose.msk.msra.mxu0 %vm210_vm2, %v1303_v8  ;;  %2912 = vmatpush3.xpose.msk.msra.mxu1 %vm210_vm2, %v1472_v7 }
 0xe99   :  { %2921 = vmatprep.subr.mxu1 %v3193_v15  ;;  %2906 = vmatprep.subr.mxu0 %v3193_v15 }
 0xe9b   :  { %2904 = vmatmul.mubr.msk.f32.vlgmr.msra.gmra.mrb[10].mxu0 %vm210_vm2, %v3575_v1  ;;  %v1470_v9 = vpop.permute.xlu1 %1469  ;;  %v1812_v13 = vpop.permute.xlu0 %1811 }
 0xe9c   :  { %2914 = vmatmul.mubr.msk.f32.vlgmr.msra.gmra.mrb[10].mxu1 %vm210_vm2, %v1470_v9  ;;  %2908 = vmatprep.mubr.msk.f32.mxu0 %vm3194_vm1, %v3193_v15 }
 0xe9d   :  { %2923 = vmatprep.mubr.msk.f32.mxu1 %vm3194_vm1, %v3193_v15 }
 0xe9f   :  { %v1645_v10 = vpop.permute.xlu1 %1644 }
 0xea0   :  { %2922 = vmatpush3.xpose.msk.msra.mxu1 %vm210_vm2, %v1645_v10  ;;  %v3030_v10 = vld [vmem:[%s3862_s29 + $0x10] sm:$0xff]  }
 0xea1   :  { %2931 = vmatprep.subr.mxu1 %v3193_v15 }
 0xea3   :  { %2924 = vmatmul.mubr.msk.f32.vlgmr.msra.gmra.mrb[20].mxu1 %vm210_vm2, %v3581_v6  ;;  %v1814_v12 = vpop.permute.xlu1 %1813 }
 0xea4   :  { %2932 = vmatpush3.xpose.msk.msra.mxu1 %vm210_vm2, %v1814_v12  ;;  %2933 = vmatprep.mubr.msk.f32.mxu1 %vm3194_vm1, %v3193_v15 }
 0xea5   :  { %2941 = vmatprep.subr.bf16.mxu1 %v3193_v15 }
 0xea7   :  { %2934 = vmatmul.mubr.msk.f32.vlgmr.msra.gmra.mrb[22].mxu1 %vm210_vm2, %v1812_v13 }
 0xea8   :  { %2945 = vmatprep.mubr.msk.bf16.mxu1 %vm3194_vm1, %v3193_v15  ;;  %2942 = vmatpush3.bf16.msra.mxu1 %v3030_v10  ;;  %v2713_v10 = vld [vmem:[%s3823_s12 + $0x1] ss:$0 sm:$0xff] }
 0xea9   :  { %2943 = vmatprep.subr.bf16.mxu1 %v3193_v15 }
 0xf6e   :  { %v1374_v14 = vpop.f32.mrb[10].mxu0 }
 0xf6f   :  { %v1378_v16 = vmul.f32 0.25, %v1374_v14  ;;  %v2905_v17 = vpop.f32.mrb[11].mxu0  ;;  %v1543_v4 = vpop.f32.mrb[10].mxu1  ;;  %v3031_v14 = vld [vmem:[%s3862_s29 + $0x18] sm:$0xff]  }
 0xf70   :  { %v1547_v18 = vmul.f32 0.25, %v1543_v4  ;;  %v2915_v19 = vpop.f32.mrb[11].mxu1  ;;  %2944 = vmatpush3.bf16.msra.mxu1 %v3031_v14 }
 0xf71   :  { %v1379_v20 = vadd.f32 %v1378_v16, %v3400_v48  ;;  %2957 = vmatprep.subr.bf16.mxu1 %v3193_v15 }
 0xf72   :  { %v1548_v21 = vadd.f32 %v1547_v18, %v3400_v48 }
 0xf73   :  { %v1380_v22 = vsel %vm291_vm3, %v1379_v20, -inf }
 0xf74   :  { %1381 = vmax.xlane.f32.xlu1 %v1380_v22  ;;  %v1549_v23 = vsel %vm291_vm3, %v1548_v21, -inf }
 0xf75   :  { %1550 = vmax.xlane.f32.xlu0 %v1549_v23 }
 0xf76   :  { %v1716_v24 = vpop.f32.mrb[20].mxu1 }
 0xf77   :  { %v1720_v25 = vmul.f32 0.25, %v1716_v24  ;;  %v2925_v26 = vpop.f32.mrb[21].mxu1 }
 0xf79   :  { %v1721_v27 = vadd.f32 %v1720_v25, %v3439_v11 }
 0xf7a   :  { %v1885_v28 = vpop.f32.mrb[22].mxu1 }
 0xf7b   :  { %v1889_v31 = vmul.f32 0.25, %v1885_v28  ;;  %v2935_v32 = vpop.f32.mrb[23].mxu1  ;;  %v1722_v29 = vsel %vm291_vm3, %v1721_v27, -inf  ;;  %v2700_v28 = vld [vmem:[%s3863_s28 + $0x1] ss:$0 sm:$0xff] }
 0xf7c   :  { %1723 = vmax.xlane.f32.xlu0 %v1722_v29 }
 0xf7d   :  { %v1890_v30 = vadd.f32 %v1889_v31, %v3439_v11 }
 0xf7f   :  { %v1891_v48 = vsel %vm291_vm3, %v1890_v30, -inf }
 0xf80   :  { %1892 = vmax.xlane.f32.xlu0 %v1891_v48 }
 0xf85   :  { %1393 = vrot.lane.b32.xlu1 %v3575_v1, %s3864_s30 }
0x1001   :  { %v1382_v33 = vpop.xlane.xlu1 %1381 }
0x1002   :  { %v1383_v34 = vsub.f32 %v1379_v20, %v1382_v33  ;;  %v1551_v35 = vpop.xlane.xlu0 %1550 }
0x1003   :  { %v1552_v37 = vsub.f32 %v1548_v21, %v1551_v35 }
0x1004   :  { %v1384_v38 = vmul.f32 1.442695, %v1383_v34 }
0x1005   :  { %v1553_v36 = vmul.f32 1.442695, %v1552_v37  ;;  %v1394_v39 = vpop.permute.xlu1 %1393 }
0x1006   :  { %3074 = vpow2.f32 %v1384_v38  ;;  %2907 = vmatpush3.msra.mxu0 %v1394_v39 }
0x1007   :  { %3076 = vpow2.f32 %v1553_v36  ;;  %2916 = vmatprep.subr.mxu0 %v3193_v15 }
0x1009   :  { %v1724_v41 = vpop.xlane.xlu0 %1723 }
0x100a   :  { %v1725_v11 = vsub.f32 %v1721_v27, %v1724_v41 }
0x100c   :  { %v1726_v43 = vmul.f32 1.442695, %v1725_v11 }
0x100d   :  { %v1893_v44 = vpop.xlane.xlu0 %1892 }
0x100e   :  { %3078 = vpow2.f32 %v1726_v43  ;;  %v1894_v46 = vsub.f32 %v1890_v30, %v1893_v44 }
0x1010   :  { %v3075_v47 = vpop.eup %3074  ;;  %v1895_v49 = vmul.f32 1.442695, %v1894_v46 }
0x1011   :  { %v3077_v50 = vpop.eup %3076  ;;  %v1386_v51 = vsel %vm291_vm3, %v3075_v47, 0.0 }
0x1012   :  { %3080 = vpow2.f32 %v1895_v49  ;;  %1387 = vadd.xlane.f32.xlu1 %v1386_v51  ;;  %v1555_v52 = vsel %vm291_vm3, %v3077_v50, 0.0 }
0x1013   :  { %1556 = vadd.xlane.f32.xlu0 %v1555_v52 }
0x1018   :  { %v3079_v40 = vpop.eup %3078 }
0x1019   :  { %v1728_v53 = vsel %vm291_vm3, %v3079_v40, 0.0 }
0x101a   :  { %1729 = vadd.xlane.f32.xlu1 %v1728_v53 }
0x101c   :  { %v3081_v54 = vpop.eup %3080 }
0x101d   :  { %v1897_v55 = vsel %vm291_vm3, %v3081_v54, 0.0 }
0x101e   :  { %1898 = vadd.xlane.f32.xlu0 %v1897_v55 }
0x102b   :  { %1735 = vrot.lane.b32.xlu1 %v3581_v6, %s3864_s30 }
0x102f   :  { %1904 = vrot.lane.b32.xlu1 %v3581_v6, %s3865_s3 }
0x1034   :  { %1562 = vrot.lane.b32.xlu0 %v3575_v1, %s3865_s3 }
0x109f   :  { %v1388_v56 = vpop.xlane.xlu1 %1387 }
0x10a0   :  { %3082 = vrcp.f32 %v1388_v56  ;;  %v1557_v57 = vpop.xlane.xlu0 %1556 }
0x10a1   :  { %3084 = vrcp.f32 %v1557_v57 }
0x10a7   :  { %v1730_v58 = vpop.xlane.xlu1 %1729 }
0x10a8   :  { %3086 = vrcp.f32 %v1730_v58  ;;  %v2706_v58 = vld [vmem:[%s3820_s9 + $0x1] ss:$0 sm:$0xff] }
0x10aa   :  { %v3083_v59 = vpop.eup %3082 }
0x10ab   :  { %v3085_v62 = vpop.eup %3084  ;;  %v1390_v63 = vmul.f32 %v3083_v59, %v3075_v47  ;;  %v1899_v0 = vpop.xlane.xlu0 %1898 }
0x10ac   :  { %v1559_v2 = vmul.f32 %v3085_v62, %v3077_v50  ;;  %3088 = vrcp.f32 %v1899_v0  ;;  %v1736_v1 = vpop.permute.xlu1 %1735  ;;  %v3033_v50 = vld [vmem:[%s3822_s11 + $0x18] sm:$0xff]   ;;  %v2707_v0 = vld [vmem:[%s3821_s10 + $0x1] ss:$0 sm:$0xff]  ;;  %s3203_s10 = smov [#allocation5]  }
0x10ad   :  { %2681 = vst.msk [vmem:[%s3832_s21 + $0x20] sm:$0xff] %vm291_vm3, %v1390_v63  ;;  %2909 = vmatmul.mubr.msk.f32.vlgmr.msra.gmra.mrb[20].mxu0 %vm291_vm3, %v1390_v63  ;;  %s2593_s2 = sshll.u32 %s3203_s10, 4  ;;  %s2594_s2 = int_to_ptr.vmem [resolvable:$true] %s2593_s2 }
0x10ae   :  { %2685 = vst.msk [vmem:[%s3832_s21 + $0x28] sm:$0xff] %vm291_vm3, %v1559_v2  ;;  %2918 = vmatprep.mubr.msk.f32.mxu0 %vm3194_vm1, %v3193_v15 }
0x10af   :  { %v1563_v3 = vpop.permute.xlu0 %1562 }
0x10b0   :  { %2917 = vmatpush3.msra.mxu0 %v1563_v3  ;;  %v1905_v7 = vpop.permute.xlu1 %1904 }
0x10b1   :  { %2919 = vmatmul.mubr.msk.f32.vlgmr.msra.gmra.mrb[22].mxu0 %vm291_vm3, %v1559_v2  ;;  %2926 = vmatprep.subr.mxu0 %v3193_v15 }
0x10b2   :  { %v3087_v5 = vpop.eup %3086  ;;  %2927 = vmatpush3.msra.mxu0 %v1736_v1  ;;  %2928 = vmatprep.mubr.msk.f32.mxu0 %vm3194_vm1, %v3193_v15 }
0x10b3   :  { %v1732_v6 = vmul.f32 %v3087_v5, %v3079_v40  ;;  %2936 = vmatprep.subr.mxu0 %v3193_v15 }
0x10b5   :  { %2689 = vst.msk [vmem:[%s3832_s21 + $0x30] sm:$0xff] %vm291_vm3, %v1732_v6  ;;  %2929 = vmatmul.mubr.msk.f32.vlgmr.msra.gmra.mrb[24].mxu0 %vm291_vm3, %v1732_v6  ;;  %v3034_v6 = vld [vmem:[%s3824_s13 + $0x20] sm:$0xff]  }
0x10b6   :  { %v3089_v8 = vpop.eup %3088  ;;  %2937 = vmatpush3.msra.mxu0 %v1905_v7  ;;  %2938 = vmatprep.mubr.msk.f32.mxu0 %vm3194_vm1, %v3193_v15  ;;  %v3035_v7 = vld [vmem:[%s3824_s13 + $0x28] sm:$0xff]  }
0x10b7   :  { %v1901_v9 = vmul.f32 %v3089_v8, %v3081_v54  ;;  %2949 = vmatprep.subr.bf16.mxu0 %v3193_v15  ;;  %v3036_v8 = vld [vmem:[%s3824_s13 + $0x30] sm:$0xff]  }
0x10b9   :  { %2693 = vst.msk [vmem:[%s3832_s21 + $0x38] sm:$0xff] %vm291_vm3, %v1901_v9  ;;  %2939 = vmatmul.mubr.msk.f32.vlgmr.msra.gmra.mrb[26].mxu0 %vm291_vm3, %v1901_v9  ;;  %s3866_s21 = smov 16   ;;  %v3037_v9 = vld [vmem:[%s3824_s13 + $0x38] sm:$0xff]  }
0x10ba   :  { %2953 = vmatprep.mubr.msk.bf16.mxu0 %vm3194_vm1, %v3193_v15 }
0x1180   :  { %v1465_v12 = vpop.f32.mrb[20].mxu0 }
0x1181   :  { %v2910_v13 = vpop.f32.mrb[21].mxu0 }
0x1184   :  { %v1634_v16 = vpop.f32.mrb[22].mxu0 }
0x1185   :  { %v2920_v17 = vpop.f32.mrb[23].mxu0 }
0x1188   :  { %v1807_v4 = vpop.f32.mrb[24].mxu0 }
0x1189   :  { %v2930_v18 = vpop.f32.mrb[25].mxu0 }
0x118c   :  { %v1976_v19 = vpop.f32.mrb[26].mxu0 }
0x118d   :  { %v3013_v20 = vpack.i.bf16 %v1976_v19, %v1634_v16  ;;  %v2940_v21 = vpop.f32.mrb[27].mxu0 }
0x118f   :  { %3014 = vrot.lane.b32.xlu1 %v3013_v20, %s3866_s21 }
0x1201   :  { %v3015_v22 = vpop.permute.xlu1 %3014 }
0x1202   :  { %v3017_v23 = vunpack.i.h.bf16 %v3015_v22  ;;  %v3016_v24 = vunpack.i.l.bf16 %v3015_v22 }
0x1204   :  { %v1984_v25 = vsel %vm210_vm2, %v1807_v4, %v3017_v23  ;;  %v1642_v26 = vsel %vm210_vm2, %v1465_v12, %v3016_v24 }
0x1205   :  { %v1985_v27 = vpack.c.bf16 %v1984_v25, %v1642_v26 }
0x1207   :  { %2946 = vmatmul.mubr.msk.bf16.vlgmr.msra.gmra.mrb[24].mxu1 %vm92_vm0, %v1985_v27 }
0x1208   :  { %2965 = vmatprep.mubr.msk.bf16.mxu1 %vm3194_vm1, %v3193_v15  ;;  %2958 = vmatpush3.bf16.msra.mxu1 %v3034_v6 }
0x1209   :  { %2959 = vmatprep.subr.bf16.mxu1 %v3193_v15 }
0x120c   :  { %2960 = vmatpush3.bf16.msra.mxu1 %v3035_v7 }
0x120d   :  { %2961 = vmatprep.subr.bf16.mxu1 %v3193_v15 }
0x1210   :  { %2962 = vmatpush3.bf16.msra.mxu1 %v3036_v8 }
0x1211   :  { %2963 = vmatprep.subr.bf16.mxu1 %v3193_v15 }
0x1214   :  { %2964 = vmatpush3.bf16.msra.mxu1 %v3037_v9  ;;  %v2735_v9 = vld [vmem:[%s3827_s16 + $0x1] ss:$0 sm:$0xff] }
0x1215   :  { %2984 = vmatprep.subr.bf16.mxu1 %v3193_v15 }
0x12da   :  { %v2048_v31 = vpop.f32.mrb[24].mxu1 }
0x12db   :  { %v2049_v32 = vadd.f32 %v2700_v28, %v2048_v31  ;;  %v2947_v29 = vpop.f32.mrb[25].mxu1 }
0x12dc   :  { %v2051_v30 = vpop.f32.mrb[26].mxu1 }
0x12dd   :  { %v2052_v48 = vadd.f32 %v2700_v28, %v2051_v30  ;;  %v2948_v33 = vpop.f32.mrb[27].mxu1  ;;  %v2055_v34 = vadd.f32 %v2049_v32, %v3563_v60 }
0x12df   :  { %v2061_v35 = vsel %vm92_vm0, %v2055_v34, 0.0  ;;  %v2056_v37 = vadd.f32 %v2052_v48, %v3565_v61  ;;  %v3032_v61 = vld [vmem:[%s3822_s11 + $0x10] sm:$0xff]  }
0x12e0   :  { %2062 = vadd.xlane.f32.xlu0 %v2061_v35  ;;  %2950 = vmatpush3.bf16.msra.mxu0 %v3032_v61 }
0x12e1   :  { %v2064_v38 = vsel %vm92_vm0, %v2056_v37, 0.0  ;;  %2951 = vmatprep.subr.bf16.mxu0 %v3193_v15 }
0x12e2   :  { %2065 = vadd.xlane.f32.xlu1 %v2064_v38 }
0x12e4   :  { %2952 = vmatpush3.bf16.msra.mxu0 %v3033_v50 }
0x136d   :  { %v2063_v36 = vpop.xlane.xlu0 %2062 }
0x136e   :  { %v2067_v39 = vmul.f32 0.03125, %v2063_v36 }
0x136f   :  { %v2066_v41 = vpop.xlane.xlu1 %2065 }
0x1370   :  { %v2069_v11 = vsub.f32 %v2055_v34, %v2067_v39  ;;  %v2068_v43 = vmul.f32 0.03125, %v2066_v41 }
0x1372   :  { %v2070_v44 = vsub.f32 %v2056_v37, %v2068_v43  ;;  %v2071_v46 = vmul.f32 %v2069_v11, %v2069_v11  ;;  %v2726_v37 = vld [vmem:[%s3825_s14 + $0x1] ss:$0 sm:$0xff] }
0x1374   :  { %v2073_v47 = vsel %vm92_vm0, %v2071_v46, 0.0  ;;  %v2072_v49 = vmul.f32 %v2070_v44, %v2070_v44 }
0x1375   :  { %2074 = vadd.xlane.f32.xlu0 %v2073_v47 }
0x1376   :  { %v2076_v60 = vsel %vm92_vm0, %v2072_v49, 0.0 }
0x1379   :  { %2077 = vadd.xlane.f32.xlu0 %v2076_v60 }
0x1402   :  { %v2075_v51 = vpop.xlane.xlu0 %2074 }
0x1403   :  { %v2079_v52 = vmul.f32 0.03125, %v2075_v51 }
0x1405   :  { %v2081_v40 = vadd.f32 1e-12, %v2079_v52 }
0x1406   :  { %v2078_v53 = vpop.xlane.xlu0 %2077 }
0x1407   :  { %3090 = vrsqrt.f32 %v2081_v40  ;;  %v2080_v54 = vmul.f32 0.03125, %v2078_v53 }
0x1409   :  { %v2082_v55 = vadd.f32 1e-12, %v2080_v54 }
0x140b   :  { %3092 = vrsqrt.f32 %v2082_v55 }
0x1411   :  { %v3091_v56 = vpop.eup %3090 }
0x1412   :  { %v2085_v57 = vmul.f32 %v3091_v56, %v2069_v11 }
0x1414   :  { %v2093_v62 = vmul.f32 %v2706_v58, %v2085_v57  ;;  %v3201_v57 = vmov 0.0|0.0  }
0x1415   :  { %v3093_v59 = vpop.eup %3092  ;;  %2992 = vmatprep.subr.bf16.mxu0 %v3201_v57 }
0x1416   :  { %v2086_v63 = vmul.f32 %v3093_v59, %v2070_v44  ;;  %v2101_v1 = vadd.f32 %v2707_v0, %v2093_v62 }
0x1418   :  { %v2094_v2 = vmul.f32 %v2706_v58, %v2086_v63 }
0x141a   :  { %v2102_v3 = vadd.f32 %v2707_v0, %v2094_v2 }
0x141c   :  { %v2103_v5 = vpack.c.bf16 %v2102_v3, %v2101_v1 }
0x141e   :  { %2954 = vmatmul.mubr.msk.bf16.vlgmr.msra.gmra.mrb[28].mxu0 %vm92_vm0, %v2103_v5 }
0x141f   :  { %2973 = vmatprep.mubr.msk.f32.mxu0 %vm3194_vm1, %v3193_v15 }
0x14f1   :  { %v2166_v12 = vpop.f32.mrb[28].mxu0 }
0x14f2   :  { %v2167_v13 = vadd.f32 %v2713_v10, %v2166_v12  ;;  %v2955_v14 = vpop.f32.mrb[29].mxu0  ;;  %v2329_v12 = vmul.u32 8, %v3397_v45 }
0x14f3   :  { %v2169_v16 = vpop.f32.mrb[30].mxu0 }
0x14f4   :  { %v2175_v17 = vmul.f32 0.044715, %v2167_v13  ;;  %v2170_v4 = vadd.f32 %v2713_v10, %v2169_v16  ;;  %v2956_v18 = vpop.f32.mrb[31].mxu0  ;;  %v2173_v29 = vmul.f32 0.5, %v2167_v13  ;;  %v2328_v10 = vand.u32 127, %v286_v42  ;;  %v3039_v42 = vld [vmem:[%s3828_s17 + $0x8] sm:$0xff]  }
0x14f5   :  { %v3038_v18 = vld [vmem:[%s3828_s17] sm:$0xff]  }
0x14f6   :  { %v2177_v19 = vmul.f32 %v2175_v17, %v2167_v13  ;;  %v2176_v20 = vmul.f32 0.044715, %v2170_v4  ;;  %v2174_v30 = vmul.f32 0.5, %v2170_v4  ;;  %vm2330_vm5 = vcmp.eq.s32.totalorder %v2328_v10, %v2329_v12 }
0x14f8   :  { %v2179_v21 = vmul.f32 %v2177_v19, %v2167_v13  ;;  %v2178_v22 = vmul.f32 %v2176_v20, %v2170_v4 }
0x14fa   :  { %v2181_v23 = vadd.f32 %v2179_v21, %v2167_v13  ;;  %v2180_v24 = vmul.f32 %v2178_v22, %v2170_v4  ;;  %v3040_v22 = vld [vmem:[%s3830_s19] sm:$0xff]  }
0x14fc   :  { %v2183_v25 = vmul.f32 0.7978846, %v2181_v23  ;;  %v2182_v26 = vadd.f32 %v2180_v24, %v2170_v4  ;;  %v2736_v4 = vsel %vm2330_vm5, 1.0, %v3193_v15  ;;  %v3041_v23 = vld [vmem:[%s3830_s19 + $0x8] sm:$0xff]   ;;  %v2738_v24 = vld [vmem:[%s3829_s18] ss:$0 sm:$0xff] }
0x14fd   :  { %s2558_s19 = sld [smem:[#allocation2]] }
0x14fe   :  { %3094 = vtanh.f32 %v2183_v25  ;;  %v2184_v27 = vmul.f32 0.7978846, %v2182_v26 }
0x1500   :  { %3096 = vtanh.f32 %v2184_v27 }
0x1508   :  { %v3095_v28 = vpop.eup %3094 }
0x1509   :  { %v2187_v31 = vadd.f32 1.0, %v3095_v28 }
0x150a   :  { %v3097_v32 = vpop.eup %3096 }
0x150b   :  { %v2188_v48 = vadd.f32 1.0, %v3097_v32  ;;  %v2189_v33 = vmul.f32 %v2187_v31, %v2173_v29 }
0x150d   :  { %v2190_v34 = vmul.f32 %v2188_v48, %v2174_v30  ;;  %v2559_v30 = vstv %s2558_s19 }
0x150e   :  { %v2560_v48 = vsel %vm2557_vm7, %v2559_v30, 0 }
0x150f   :  { %v2191_v35 = vpack.c.bf16 %v2190_v34, %v2189_v33  ;;  %v2563_v33 = vstv %s2746_s4 }
0x1510   :  { %v2564_v34 = vsel %vm2561_vm8, %v2563_v33, %v2560_v48 }
0x1511   :  { %2966 = vmatmul.mubr.msk.bf16.vlgmr.msra.gmra.mrb[28].mxu1 %vm1140_vm4, %v2191_v35  ;;  %vm2565_vm9 = vcmp.eq.s32.totalorder %v2328_v10, %v2564_v34  ;;  %v2742_v35 = vld [vmem:[%s3831_s20] ss:$0 sm:$0xff]  ;;  %s3202_s20 = smov [#allocation6]  }
0x1512   :  { %2988 = vmatprep.mubr.msk.bf16.mxu1 %vm3194_vm1, %v3193_v15  ;;  %2985 = vmatpush3.bf16.msra.mxu1 %v3040_v22  ;;  %s2603_s27 = sshll.u32 %s3202_s20, 4  ;;  %s2604_s27 = int_to_ptr.vmem [resolvable:$true] %s2603_s27 }
0x1513   :  { %2986 = vmatprep.subr.bf16.mxu1 %v3193_v15  ;;  %s3120_s26 = scalar_lea.vmem %s2604_s27, 32  ;;  %p3125_p6 = scmp.lt.s32.totalorder %s2604_s27, %s2604_s27 }
0x1514   :  { %p3121_p5 = scmp.ne.s32.totalorder %s2604_s27, %s3120_s26  ;;  %p3126_p7 = scmp.lt.s32.totalorder %s3120_s26, %s3120_s26 }
0x1516   :  { %2987 = vmatpush3.bf16.msra.mxu1 %v3041_v23  ;;  %p3127_p8 = por %p3126_p7, %p3125_p6 }
0x1518   :  { %p3128_p9 = pnand %p3127_p8, %p3121_p5 }
0x15e4   :  { %v2270_v38 = vpop.f32.mrb[28].mxu1 }
0x15e5   :  { %v2271_v36 = vadd.f32 %v2726_v37, %v2270_v38  ;;  %v2967_v39 = vpop.f32.mrb[29].mxu1  ;;  %v2747_v38 = vsel %vm2565_vm9, 1.0, %v3193_v15 }
0x15e6   :  { %v2273_v41 = vpop.f32.mrb[30].mxu1 }
0x15e7   :  { %v2274_v11 = vadd.f32 %v2726_v37, %v2273_v41  ;;  %v2968_v43 = vpop.f32.mrb[31].mxu1  ;;  %v2277_v44 = vadd.f32 %v2271_v36, %v2101_v1 }
0x15e9   :  { %v2283_v46 = vsel %vm92_vm0, %v2277_v44, 0.0  ;;  %v2278_v47 = vadd.f32 %v2274_v11, %v2102_v3  ;;  %v2734_v3 = vld [vmem:[%s3826_s15 + $0x1] ss:$0 sm:$0xff] }
0x15ea   :  { %2284 = vadd.xlane.f32.xlu0 %v2283_v46 }
0x15eb   :  { %v2286_v49 = vsel %vm92_vm0, %v2278_v47, 0.0 }
0x15ec   :  { %2287 = vadd.xlane.f32.xlu1 %v2286_v49 }
0x1677   :  { %v2285_v60 = vpop.xlane.xlu0 %2284 }
0x1678   :  { %v2289_v61 = vmul.f32 0.03125, %v2285_v60 }
0x1679   :  { %v2288_v50 = vpop.xlane.xlu1 %2287 }
0x167a   :  { %v2291_v51 = vsub.f32 %v2277_v44, %v2289_v61  ;;  %v2290_v52 = vmul.f32 0.03125, %v2288_v50 }
0x167c   :  { %v2292_v40 = vsub.f32 %v2278_v47, %v2290_v52  ;;  %v2293_v53 = vmul.f32 %v2291_v51, %v2291_v51 }
0x167e   :  { %v2295_v54 = vsel %vm92_vm0, %v2293_v53, 0.0  ;;  %v2294_v55 = vmul.f32 %v2292_v40, %v2292_v40 }
0x167f   :  { %2296 = vadd.xlane.f32.xlu0 %v2295_v54 }
0x1680   :  { %v2298_v56 = vsel %vm92_vm0, %v2294_v55, 0.0 }
0x1681   :  { %2299 = vadd.xlane.f32.xlu1 %v2298_v56 }
0x170c   :  { %v2297_v58 = vpop.xlane.xlu0 %2296 }
0x170d   :  { %v2301_v59 = vmul.f32 0.03125, %v2297_v58 }
0x170e   :  { %v2300_v62 = vpop.xlane.xlu1 %2299 }
0x170f   :  { %v2303_v63 = vadd.f32 1e-12, %v2301_v59  ;;  %v2302_v0 = vmul.f32 0.03125, %v2300_v62 }
0x1711   :  { %3098 = vrsqrt.f32 %v2303_v63  ;;  %v2304_v2 = vadd.f32 1e-12, %v2302_v0 }
0x1713   :  { %3100 = vrsqrt.f32 %v2304_v2 }
0x171b   :  { %v3099_v1 = vpop.eup %3098 }
0x171c   :  { %v2307_v5 = vmul.f32 %v3099_v1, %v2291_v51 }
0x171d   :  { %v3101_v6 = vpop.eup %3100 }
0x171e   :  { %v2308_v7 = vmul.f32 %v3101_v6, %v2292_v40  ;;  %v2315_v8 = vmul.f32 %v2734_v3, %v2307_v5 }
0x1720   :  { %v2316_v13 = vmul.f32 %v2734_v3, %v2308_v7  ;;  %v2323_v14 = vadd.f32 %v2735_v9, %v2315_v8 }
0x1722   :  { %v2324_v16 = vadd.f32 %v2735_v9, %v2316_v13 }
0x1724   :  { %v2993_v17 = vpack.c.bf16 %v2324_v16, %v2323_v14 }
0x1726   :  { %2994 = vmatpush3.bf16.msra.mxu0 %v2993_v17 }
0x1727   :  { %2976 = vmatprep.subr.bf16.mxu0 %v3193_v15 }
0x1729   :  { %2974 = vmatmul.mubr.msk.f32.vlgmr.msra.gmra.mrb[32].mxu0 %vm210_vm2, %v2736_v4 }
0x172a   :  { %2977 = vmatpush3.bf16.msra.mxu0 %v3038_v18  ;;  %2980 = vmatprep.mubr.msk.bf16.mxu0 %vm3194_vm1, %v3193_v15 }
0x172b   :  { %2978 = vmatprep.subr.bf16.mxu0 %v3193_v15 }
0x172e   :  { %2979 = vmatpush3.bf16.msra.mxu0 %v3039_v42 }
0x17fc   :  { %v2402_v19 = vpop.f32.mrb[32].mxu0 }
0x17fd   :  { %v2406_v20 = vpack.c.bf16 %v2402_v19, %v2402_v19  ;;  %v2975_v21 = vpop.f32.mrb[33].mxu0 }
0x17ff   :  { %2981 = vmatmul.mubr.msk.bf16.vlgmr.msra.gmra.mrb[36].mxu0 %vm92_vm0, %v2406_v20 }
0x18d2   :  { %v2467_v25 = vpop.f32.mrb[36].mxu0 }
0x18d3   :  { %v2468_v26 = vadd.f32 %v2738_v24, %v2467_v25  ;;  %v2982_v27 = vpop.f32.mrb[37].mxu0 }
0x18d4   :  { %v2470_v28 = vpop.f32.mrb[38].mxu0 }
0x18d5   :  { %3102 = vtanh.f32 %v2468_v26  ;;  %v2983_v31 = vpop.f32.mrb[39].mxu0 }
0x18df   :  { %v3103_v32 = vpop.eup %3102 }
0x18e0   :  { %v2476_v29 = vpack.c.bf16 %v3103_v32, %v3103_v32  ;;  %2475 = vst.msk [vmem:[#allocation6] sm:$0x3] %vm2474_vm6, %v3103_v32 }
0x18e2   :  { %2989 = vmatmul.mubr.msk.bf16.vlgmr.msra.gmra.mrb[32].mxu1 %vm92_vm0, %v2476_v29 }
0x19b5   :  { %v2537_v37 = vpop.f32.mrb[32].mxu1 }
0x19b6   :  { %v2538_v36 = vadd.f32 %v2742_v35, %v2537_v37  ;;  %v2990_v39 = vpop.f32.mrb[33].mxu1 }
0x19b7   :  { %v2540_v41 = vpop.f32.mrb[34].mxu1 }
0x19b8   :  { %v2545_v11 = vsel %vm2543_vm10, %v2538_v36, -inf  ;;  %2544 = vst.msk [vmem:[#allocation5] sm:$0x3] %vm2543_vm10, %v2538_v36  ;;  %v2991_v43 = vpop.f32.mrb[35].mxu1  ;;  %v2568_v45 = vmul.f32 %v2747_v38, %v2538_v36 }
0x19b9   :  { %2546 = vmax.xlane.f32.xlu0 %v2545_v11 }
0x19ba   :  { %v2569_v44 = vsel %vm2543_vm10, %v2568_v45, 0.0 }
0x19bd   :  { %2570 = vadd.xlane.f32.xlu0 %v2569_v44 }
0x1a46   :  { %v2547_v46 = vpop.xlane.xlu0 %2546 }
0x1a47   :  { %v2548_v47 = vsub.f32 %v2538_v36, %v2547_v46 }
0x1a49   :  { %v2549_v49 = vmul.f32 1.442695, %v2548_v47 }
0x1a4b   :  { %3104 = vpow2.f32 %v2549_v49 }
0x1a55   :  { %v3105_v60 = vpop.eup %3104 }
0x1a56   :  { %v2551_v15 = vsel %vm2543_vm10, %v3105_v60, 0.0 }
0x1a57   :  { %2552 = vadd.xlane.f32.xlu1 %v2551_v15 }
0x1a58   :  { %3131 = shalt.err (!%p3128_p9)
}
0x1a59   :  { %s3132_s29 = scalar_lea.hbm %s3834_s23, 32 }
0x1a5a   :  { %p3133_p10 = scmp.ne.s32.totalorder %s3834_s23, %s3132_s29  ;;  %p3136_p11 = scmp.lt.u32.totalorder %s3132_s29, %s3834_s23 }
0x1a5c   :  { %p3138_p12 = pnand %p3136_p11, %p3133_p10 }
0x1a5e   :  { %3141 = shalt.err (!%p3138_p12)
}
0x1a5f   :  { %2606 = dma.vmem_to_hbm [thread:$0]  %s2604_s27, 32, %s3834_s23, [#allocation7]  }
0x1a60   :  { %s3142_s15 = scalar_lea.vmem %s2594_s2, 32  ;;  %p3147_p0 = scmp.lt.s32.totalorder %s2594_s2, %s2594_s2 }
0x1a61   :  { %p3143_p13 = scmp.ne.s32.totalorder %s2594_s2, %s3142_s15  ;;  %p3148_p1 = scmp.lt.s32.totalorder %s3142_s15, %s3142_s15 }
0x1a63   :  { %p3149_p2 = por %p3148_p1, %p3147_p0 }
0x1a65   :  { %p3150_p3 = pnand %p3149_p2, %p3143_p13 }
0x1a67   :  { %3153 = shalt.err (!%p3150_p3)
}
0x1a68   :  { %s3154_s6 = scalar_lea.hbm %s3833_s22, 32 }
0x1a69   :  { %p3155_p4 = scmp.ne.s32.totalorder %s3833_s22, %s3154_s6  ;;  %p3158_p5 = scmp.lt.u32.totalorder %s3154_s6, %s3833_s22 }
0x1a6b   :  { %p3160_p6 = pnand %p3158_p5, %p3155_p4 }
0x1a6d   :  { %3163 = shalt.err (!%p3160_p6)
}
0x1a6e   :  { %2596 = dma.vmem_to_hbm [thread:$0]  %s2594_s2, 32, %s3833_s22, [#allocation3]   ;;  %v2571_v40 = vpop.xlane.xlu0 %2570  ;;  %vm2573_vm11 = vcmask 1041408   ;;  %vm2583_vm12 = vcmask 0  }
0x1a6f   :  { %s3204_s17 = smov [#allocation8]  }
0x1a70   :  { %s2613_s19 = sshll.u32 %s3204_s17, 4  ;;  %s2614_s19 = int_to_ptr.vmem [resolvable:$true] %s2613_s19 }
0x1a71   :  { %s3164_s22 = scalar_lea.vmem %s2614_s19, 16  ;;  %s3168_s4 = scalar_lea.vmem %s2614_s19, 32 }
0x1a72   :  { %p3165_p7 = scmp.ne.s32.totalorder %s2614_s19, %s3164_s22  ;;  %p3169_p8 = scmp.lt.s32.totalorder %s2614_s19, %s2614_s19 }
0x1a73   :  { %p3170_p9 = scmp.lt.s32.totalorder %s3168_s4, %s3164_s22 }
0x1a75   :  { %p3171_p10 = por %p3170_p9, %p3169_p8 }
0x1a77   :  { %p3172_p11 = pnand %p3171_p10, %p3165_p7 }
0x1ae4   :  { %v2553_v61 = vpop.xlane.xlu1 %2552 }
0x1ae5   :  { %3106 = vlog2.f32 %v2553_v61 }
0x1aef   :  { %v3107_v50 = vpop.eup %3106 }
0x1af0   :  { %v2555_v51 = vmul.f32 0.6931472, %v3107_v50 }
0x1af2   :  { %v2556_v52 = vadd.f32 %v2555_v51, %v2547_v46 }
0x1af4   :  { %v2572_v53 = vsub.f32 %v2556_v52, %v2571_v40 }
0x1af6   :  { %v2574_v54 = vsel %vm2573_vm11, %v2572_v53, 0.0 }
0x1af7   :  { %v2575_v55 = vrot.slane %v2574_v54, 4 }
0x1af9   :  { %v2576_v56 = vadd.f32 %v2575_v55, %v2574_v54 }
0x1afb   :  { %v2577_v57 = vrot.slane %v2576_v56, 2 }
0x1afd   :  { %v2578_v58 = vadd.f32 %v2577_v57, %v2576_v56 }
0x1aff   :  { %v2579_v59 = vrot.slane %v2578_v58, 1 }
0x1b01   :  { %v2580_v62 = vadd.f32 %v2579_v59, %v2578_v58 }
0x1b03   :  { %v2582_v63 = vmul.f32 0.5, %v2580_v62 }
0x1b05   :  { %2584 = vst.msk [vmem:[#allocation8] sm:$0x1] %vm2583_vm12, %v2582_v63 }
0x1b06   :  { %3175 = shalt.err (!%p3172_p11)
}
0x1b07   :  { %s3176_s20 = scalar_lea.hbm %s3835_s24, 16 }
0x1b08   :  { %p3177_p12 = scmp.ne.s32.totalorder %s3835_s24, %s3176_s20  ;;  %p3180_p13 = scmp.lt.u32.totalorder %s3176_s20, %s3835_s24 }
0x1b0a   :  { %p3182_p0 = pnand %p3180_p13, %p3177_p12 }
0x1b0c   :  { %3185 = shalt.err (!%p3182_p0)
}
0x1b0d   :  { %2616 = dma.vmem_to_hbm [thread:$0]  %s2614_s19, 16, %s3835_s24, [#allocation7]  }
0x1b0e   :  { %3188 = dma.done.wait [#allocation3], 32  }
0x1b0f   :  { %3189 = vsyncadd [#allocation3], 4294967264 }
0x1b10   :  { %3190 = dma.done.wait [#allocation7], 48  }
0x1b11   :  { %3191 = vsyncadd [#allocation7], 4294967248 }
0x1b12   :  { %2628 = vsyncpa [#allocation3], 1 }
0x1b13   :  { %2629 = vsyncpa [#allocation7], 1 }
0x1b14   :  { %2630 = vsyncpa [#allocation4], 1 }

</bundles_post_ra>
